<compile_context>
chip_gen: v7x
topology: tpu7x:2x2x1
jax: 0.10.0
libtpu: 0.0.40
codegen_flags: <defaults>
</compile_context>

<pallas_src>
import functools

import jax
import jax.numpy as jnp
from jax.experimental import pallas as pl
from jax.experimental.pallas import tpu as pltpu


# ---------------------------------------------------------------------------
# Fused Pallas kernel: (tile, K) @ (K, E) + bias -> LayerNorm over E
# ---------------------------------------------------------------------------
def _fused_kernel(x_ref, w_ref, c_ref, o_ref, *, eps):
    # Matmul on the MXU with f32 accumulation; LayerNorm math entirely in f32.
    y = jnp.dot(x_ref[...], w_ref[...], preferred_element_type=jnp.float32)
    y = y + c_ref[0:1, :]                      # folded conv+reduction bias
    mu = jnp.mean(y, axis=-1, keepdims=True)
    var = jnp.mean(jnp.square(y - mu), axis=-1, keepdims=True)
    yn = (y - mu) * jax.lax.rsqrt(var + eps)   # rsqrt -> EUP slot
    o_ref[...] = (yn * c_ref[1:2, :] + c_ref[2:3, :]).astype(o_ref.dtype)


# ---------------------------------------------------------------------------
# VMEM / tiling helpers
# ---------------------------------------------------------------------------
def _vmem_capacity_bytes():
    try:
        return int(pltpu.get_tpu_info().vmem_capacity_bytes)
    except Exception:
        return 64 << 20          # conservative default: v7x per-TensorCore VMEM


def _divisors(n):
    out, i = set(), 1
    while i * i <= n:
        if n % i == 0:
            out.add(i)
            out.add(n // i)
        i += 1
    return sorted(out, reverse=True)


def _vmem_need_bytes(tile, k, m, act_bytes, out_bytes, const_bufs):
    return (2 * tile * k * act_bytes          # double-buffered activation rows
            + 2 * tile * m * out_bytes        # double-buffered output rows
            + const_bufs * k * m * act_bytes  # folded weight (grid-invariant)
            + const_bufs * 8 * m * 4          # bias/gamma/beta stack (sublane pad)
            + 3 * tile * m * 4                # f32 matmul/LN intermediates
            + (1 << 20))                      # Mosaic internal scratch slack


def _choose_row_tile(n_rows, *, target, sublane, fits):
    """Largest row tile that (a) divides n_rows exactly (no pad, no ragged
    edge), (b) is a multiple of the dtype's sublane pack, (c) fits the VMEM
    budget, and (d) leaves >=4 grid steps when possible (>=2 per TensorCore on
    v7x's megacore; also gives the input DMA something to overlap with)."""
    cands = [d for d in _divisors(n_rows)
             if d <= target and (d % sublane == 0 or d == n_rows) and fits(d)]
    for min_steps, floor in ((4, 128), (2, 128), (1, sublane), (1, 1)):
        ok = [t for t in cands if n_rows // t >= min_steps and t >= floor]
        if ok:
            return ok[0]                       # cands are sorted descending
    # No usable divisor (e.g. prime n_rows): ragged last block.  Pallas drops
    # the out-of-bounds part of the final output block and LayerNorm is
    # row-wise, so garbage padded rows cannot contaminate real rows.
    if n_rows <= sublane:
        return n_rows
    t = max(sublane, min(target, (n_rows // sublane) * sublane))
    while t > sublane and not fits(t):
        t = max(sublane, ((t // 2) // sublane) * sublane)
    return t


# ---------------------------------------------------------------------------
# One pallas_call: layernorm(x @ w + bias) * gamma + beta
# ---------------------------------------------------------------------------
def _fused_linear_layernorm(x, w, consts, *, eps, out_dtype, row_tile_target,
                            conservative):
    """x: (N, K), w: (K, E), consts: (3, E) f32 rows = (bias, gamma, beta).
    The full feature dim E stays in a single block (LN stats are over E)."""
    n_rows, k = x.shape
    kw, m = w.shape
    assert k == kw, (k, kw)
    assert consts.shape == (3, m), consts.shape

    act_bytes = jnp.dtype(x.dtype).itemsize
    out_bytes = jnp.dtype(out_dtype).itemsize
    sublane = 16 if act_bytes <= 2 else 8      # bf16 packs 2 rows per sublane

    vmem_cap = _vmem_capacity_bytes()
    budget = int(0.70 * vmem_cap)              # headroom for Mosaic scratch
    const_bufs = 1 if not conservative else 2
    fits = lambda t: _vmem_need_bytes(t, k, m, act_bytes, out_bytes,
                                      const_bufs) <= budget
    tile = _choose_row_tile(n_rows, target=row_tile_target, sublane=sublane,
                            fits=fits)
    grid = (pl.cdiv(n_rows, tile),)

    def const_spec(shape):
        # Grid-invariant operands: constant index_map, so double-buffering
        # them is pure VMEM waste -> single buffer.
        if conservative:
            return pl.BlockSpec(shape, lambda i: (0, 0))
        return pl.BlockSpec(shape, lambda i: (0, 0),
                            pipeline_mode=pl.Buffered(1))

    vmem_limit = max(32 << 20, min(int(0.90 * vmem_cap), 128 << 20))
    cp_kwargs = dict(dimension_semantics=("parallel",),
                     vmem_limit_bytes=vmem_limit)
    if not conservative:
        # Let XLA fuse the patch-gather transpose/reshape (producer of x) into
        # this kernel's input copy instead of materializing a transposed copy
        # of the whole activation tensor in HBM first.
        cp_kwargs["allow_input_fusion"] = [True, False, False]

    return pl.pallas_call(
        functools.partial(_fused_kernel, eps=eps),
        out_shape=jax.ShapeDtypeStruct((n_rows, m), out_dtype),
        grid=grid,
        in_specs=[
            pl.BlockSpec((tile, k), lambda i: (i, 0)),
            const_spec((k, m)),
            const_spec((3, m)),
        ],
        out_specs=pl.BlockSpec((tile, m), lambda i: (i, 0)),
        compiler_params=pltpu.CompilerParams(**cp_kwargs),
    )(x, w, consts)


# ---------------------------------------------------------------------------
# Full forward pass (time_merge=False path of PatchEmbedSpatioTemporalV2)
# ---------------------------------------------------------------------------
def patch_embed_forward(x, params, *, patch_size, patch_size_t,
                        compute_dtype=jnp.float32, out_dtype=None,
                        eps=1e-5, row_tile=1024, conservative=False):
    """x: (B, C, H, W, T) ('b c h w t') -> (B, H//p, W//p, T//pt, embed_dim).

    Matches PatchEmbedSpatioTemporalV2.forward with time_merge=False:
      Conv1d(C, C, kernel=pt, stride=pt) over T, then ComponentMerging v2
      ('b (p1 h) (p2 w) t c -> b h w t (p1 p2 c)' + Linear), then LayerNorm.
    """
    B, C, H, W, T = x.shape
    p, pt = patch_size, patch_size_t
    Hout, Wout, Tc = H // p, W // p, T // pt
    E = params["red_w"].shape[1]
    out_dtype = compute_dtype if out_dtype is None else out_dtype

    # --- Fold Conv1d(time merge) into the reduction Linear (both linear) ----
    # conv: y[..., co] = sum_{ci,k} x[ci, t*pt+k] * conv_w[co,ci,k] + conv_b[co]
    # red:  z[..., e]  = sum_{p1,p2,co} y[(p1,p2),co] * red_w[(p1 p2 co), e] + red_b[e]
    # fold: z[..., e]  = sum_{p1,p2,ci,k} xg[(p1 p2 ci k)] * w_fold[(p1 p2 ci k), e] + b_fold[e]
    # Per-feature bias does NOT cancel in LayerNorm (only its mean does) -> keep.
    red_w_r = params["red_w"].reshape(p, p, C, E).astype(jnp.float32)
    w_fold = jnp.einsum("ock,pqoe->pqcke",
                        params["conv_w"].astype(jnp.float32),
                        red_w_r).reshape(p * p * C * pt, E)
    b_fold = jnp.einsum("o,pqoe->e", params["conv_b"].astype(jnp.float32),
                        red_w_r) + params["red_b"].astype(jnp.float32)

    # bias / gamma / beta stacked into one (3, E) f32 operand (one DMA
    # descriptor, one 8-sublane pad); LN statistics stay f32 in-kernel.
    consts = jnp.stack([b_fold,
                        params["ln_g"].astype(jnp.float32),
                        params["ln_b"].astype(jnp.float32)], axis=0)

    # --- Gather patches ------------------------------------------------------
    # einops 'b (p1 h) (p2 w) t c': p1/p2 are the OUTER factors, i.e.
    # H index = p1*Hout + h and W index = p2*Wout + w, so reshaping
    # H -> (p, Hout), W -> (p, Wout) below matches the torch rearrange exactly.
    # Cast to compute_dtype FIRST so the relayout moves half the bytes on the
    # bf16 path.  bf16 is profitable on v5e as well (bf16-native MXU); only the
    # LN math needs f32, which the kernel keeps.
    xs = x[..., : Tc * pt].astype(compute_dtype)
    x8 = xs.reshape(B, C, p, Hout, p, Wout, Tc, pt)      # pure dim split (free)
    xg = jnp.transpose(x8, (0, 3, 5, 6, 2, 4, 1, 7))     # (B,Hout,Wout,Tc,p1,p2,C,pt)
    xf = xg.reshape(B * Hout * Wout * Tc, p * p * C * pt)
    # The gather transpose stays in XLA but is offered to the kernel's input
    # copy via allow_input_fusion (see _fused_linear_layernorm).
    # TODO(synk): on v7x, consider fp8 activations/weights for the matmul
    # (cast here, keep LN in f32); do NOT use int8 there (no MXU int support).

    w_fold = w_fold.astype(compute_dtype)

    out = _fused_linear_layernorm(
        xf, w_fold, consts, eps=eps, out_dtype=out_dtype,
        row_tile_target=row_tile, conservative=conservative)
    # TODO(synk): embed_dim < 128 (E=32 in this demo) leaves the output
    # lane-sparse (masked vst) and under-fills MXU passes; production configs
    # should use embed_dim that is a multiple of 128.
    return out.reshape(B, Hout, Wout, Tc, E)


# ---------------------------------------------------------------------------
# Pure-JAX reference (mirrors the torch forward) for correctness checking
# ---------------------------------------------------------------------------
def reference_forward(x, params, *, patch_size, patch_size_t, eps=1e-5):
    B, C, H, W, T = x.shape
    p, pt = patch_size, patch_size_t
    Tc = T // pt
    xr = x[..., : Tc * pt].reshape(B, C, H, W, Tc, pt)
    y = jnp.einsum("bchwtk,ock->bhwto", xr, params["conv_w"]) + params["conv_b"]
    Hout, Wout = H // p, W // p
    y = y.reshape(B, p, Hout, p, Wout, Tc, C)
    y = jnp.transpose(y, (0, 2, 4, 5, 1, 3, 6)).reshape(B, Hout, Wout, Tc, p * p * C)
    z = y @ params["red_w"] + params["red_b"]
    mu = z.mean(-1, keepdims=True)
    var = ((z - mu) ** 2).mean(-1, keepdims=True)
    zn = (z - mu) / jnp.sqrt(var + eps)
    return zn * params["ln_g"] + params["ln_b"]


if __name__ == "__main__":
    # Module config (small, consistent with the torch module)
    num_node = 16        # H = W
    num_frame = 8        # T
    patch_size = 2
    patch_size_t = 2
    in_chans = 4
    embed_dim = 32
    batch = 2

    key = jax.random.PRNGKey(0)
    kx, kc, kr = jax.random.split(key, 3)

    # Input: (B, C, H, W, T)  -- 'b c h w t'
    x = jax.random.normal(kx, (batch, in_chans, num_node, num_node, num_frame),
                          dtype=jnp.float32)

    params = {
        # nn.Conv1d(in_chans, in_chans, kernel=pt, stride=pt): weight (C_out, C_in, pt)
        "conv_w": 0.2 * jax.random.normal(
            kc, (in_chans, in_chans, patch_size_t), jnp.float32),
        "conv_b": 0.1 * jnp.arange(in_chans, dtype=jnp.float32),
        # ComponentMerging reduction Linear(p*p*C -> embed_dim), stored as (in, out)
        "red_w": 0.1 * jax.random.normal(
            kr, (patch_size * patch_size * in_chans, embed_dim), jnp.float32),
        "red_b": 0.05 * jnp.arange(embed_dim, dtype=jnp.float32),
        # final nn.LayerNorm(embed_dim)
        "ln_g": jnp.ones((embed_dim,), jnp.float32),
        "ln_b": jnp.zeros((embed_dim,), jnp.float32),
    }

    def run(compute_dtype, conservative):
        fn = jax.jit(functools.partial(
            patch_embed_forward, patch_size=patch_size,
            patch_size_t=patch_size_t, compute_dtype=compute_dtype,
            conservative=conservative))
        return jax.block_until_ready(fn(x, params))

    conservative = False
    try:
        out = run(jnp.float32, conservative)
    except Exception:
        # Optional knobs (Buffered(1) single-buffering / allow_input_fusion)
        # not supported by this JAX/Mosaic build -> known-good fallback path.
        conservative = True
        out = run(jnp.float32, conservative)

    expected_shape = (batch, num_node // patch_size, num_node // patch_size,
                      num_frame // patch_size_t, embed_dim)
    assert out.shape == expected_shape, (out.shape, expected_shape)

    ref = reference_forward(x, params, patch_size=patch_size,
                            patch_size_t=patch_size_t)
    err = float(jnp.max(jnp.abs(out - ref)))
    assert err < 2e-4, f"f32 max abs error too large: {err}"

    # bf16 activations/weights AND bf16 output (halves HBM read + write bytes);
    # LayerNorm statistics stay f32 inside the kernel.  Relative-error check
    # (w.r.t. the reference's dynamic range) instead of a loose abs tolerance.
    out16 = run(jnp.bfloat16, conservative).astype(jnp.float32)
    scale = float(jnp.maximum(jnp.max(jnp.abs(ref)), 1.0))
    rel16 = float(jnp.max(jnp.abs(out16 - ref))) / scale
    assert rel16 < 2.5e-2, f"bf16 relative error too large: {rel16}"

    print("KERNEL_OK")
</pallas_src>

<mosaic_0001>
module attributes {stable_mosaic.version = 11 : i64} {
  func.func @_fused_kernel(%arg0: i32, %arg1: memref<128x32xf32, #tpu.memory_space<vmem>>, %arg2: memref<32x32xf32, #tpu.memory_space<vmem>>, %arg3: memref<3x32xf32, #tpu.memory_space<vmem>>, %arg4: memref<128x32xf32, #tpu.memory_space<vmem>>) attributes {dimension_semantics = [#tpu.dimension_semantics<parallel>], iteration_bounds = array<i64: 4>, scalar_prefetch = 0 : i64, scratch_operands = 0 : i64, tpu.core_type = #tpu.core_type<tc>, window_params = [{transform_indices = @transform_0, window_bounds = array<i64: 128, 32>}, {pipeline_mode = #tpu.pipeline_mode<synchronous>, transform_indices = @transform_1, window_bounds = array<i64: 32, 32>}, {pipeline_mode = #tpu.pipeline_mode<synchronous>, transform_indices = @transform_2, window_bounds = array<i64: 3, 32>}, {transform_indices = @transform_3, window_bounds = array<i64: 128, 32>}]} {
    %c0 = arith.constant 0 : index
    %c0_0 = arith.constant 0 : index
    %0 = vector.load %arg1[%c0, %c0_0] : memref<128x32xf32, #tpu.memory_space<vmem>>, vector<128x32xf32>
    %c0_1 = arith.constant 0 : index
    %c0_2 = arith.constant 0 : index
    %1 = vector.load %arg2[%c0_1, %c0_2] : memref<32x32xf32, #tpu.memory_space<vmem>>, vector<32x32xf32>
    %cst = arith.constant dense<0.000000e+00> : vector<128x32xf32>
    %2 = tpu.matmul %0, %1, %cst {dimension_numbers = #tpu.dot_dimension_numbers<[1], [0], [0], [1], [0, 0, 1, 1], [], []>} : vector<128x32xf32>, vector<32x32xf32>, vector<128x32xf32> -> vector<128x32xf32>
    %c0_3 = arith.constant 0 : index
    %c0_4 = arith.constant 0 : index
    %3 = vector.load %arg3[%c0_3, %c0_4] : memref<3x32xf32, #tpu.memory_space<vmem>>, vector<1x32xf32>
    %4 = vector.broadcast %3 : vector<1x32xf32> to vector<128x32xf32>
    %5 = arith.addf %2, %4 : vector<128x32xf32>
    %cst_5 = arith.constant dense<0.000000e+00> : vector<128xf32>
    %6 = vector.multi_reduction <add>, %5, %cst_5 [1] : vector<128x32xf32> to vector<128xf32>
    %7 = vector.shape_cast %6 : vector<128xf32> to vector<128x1xf32>
    %cst_6 = arith.constant 3.200000e+01 : f32
    %8 = vector.broadcast %cst_6 : f32 to vector<128x1xf32>
    %9 = arith.divf %7, %8 : vector<128x1xf32>
    %10 = vector.broadcast %9 : vector<128x1xf32> to vector<128x32xf32>
    %11 = arith.subf %5, %10 : vector<128x32xf32>
    %12 = arith.mulf %11, %11 : vector<128x32xf32>
    %cst_7 = arith.constant dense<0.000000e+00> : vector<128xf32>
    %13 = vector.multi_reduction <add>, %12, %cst_7 [1] : vector<128x32xf32> to vector<128xf32>
    %14 = vector.shape_cast %13 : vector<128xf32> to vector<128x1xf32>
    %cst_8 = arith.constant 3.200000e+01 : f32
    %15 = vector.broadcast %cst_8 : f32 to vector<128x1xf32>
    %16 = arith.divf %14, %15 : vector<128x1xf32>
    %17 = vector.broadcast %9 : vector<128x1xf32> to vector<128x32xf32>
    %18 = arith.subf %5, %17 : vector<128x32xf32>
    %cst_9 = arith.constant 9.99999974E-6 : f32
    %19 = vector.broadcast %cst_9 : f32 to vector<128x1xf32>
    %20 = arith.addf %16, %19 : vector<128x1xf32>
    %21 = math.rsqrt %20 : vector<128x1xf32>
    %22 = vector.broadcast %21 : vector<128x1xf32> to vector<128x32xf32>
    %23 = arith.mulf %18, %22 : vector<128x32xf32>
    %c1 = arith.constant 1 : index
    %c0_10 = arith.constant 0 : index
    %24 = vector.load %arg3[%c1, %c0_10] : memref<3x32xf32, #tpu.memory_space<vmem>>, vector<1x32xf32>
    %25 = vector.broadcast %24 : vector<1x32xf32> to vector<128x32xf32>
    %26 = arith.mulf %23, %25 : vector<128x32xf32>
    %c2 = arith.constant 2 : index
    %c0_11 = arith.constant 0 : index
    %27 = vector.load %arg3[%c2, %c0_11] : memref<3x32xf32, #tpu.memory_space<vmem>>, vector<1x32xf32>
    %28 = vector.broadcast %27 : vector<1x32xf32> to vector<128x32xf32>
    %29 = arith.addf %26, %28 : vector<128x32xf32>
    %c0_12 = arith.constant 0 : index
    %c0_13 = arith.constant 0 : index
    %30 = vector.load %arg4[%c0_12, %c0_13] : memref<128x32xf32, #tpu.memory_space<vmem>>, vector<128x32xf32>
    tpu.vector_store %arg4[%c0_12, %c0_13], %29 {strides = array<i32>} : memref<128x32xf32, #tpu.memory_space<vmem>>, vector<128x32xf32>,
    return
  }
  func.func @transform_0(%arg0: i32) -> (i32, i32) {
    %c0_i32 = arith.constant 0 : i32
    %c0_i32_0 = arith.constant 0 : i32
    return %arg0, %c0_i32 : i32, i32
  }
  func.func @transform_1(%arg0: i32) -> (i32, i32) {
    %c0_i32 = arith.constant 0 : i32
    %c0_i32_0 = arith.constant 0 : i32
    %c0_i32_1 = arith.constant 0 : i32
    return %c0_i32, %c0_i32_0 : i32, i32
  }
  func.func @transform_2(%arg0: i32) -> (i32, i32) {
    %c0_i32 = arith.constant 0 : i32
    %c0_i32_0 = arith.constant 0 : i32
    %c0_i32_1 = arith.constant 0 : i32
    return %c0_i32, %c0_i32_0 : i32, i32
  }
  func.func @transform_3(%arg0: i32) -> (i32, i32) {
    %c0_i32 = arith.constant 0 : i32
    %c0_i32_0 = arith.constant 0 : i32
    return %arg0, %c0_i32 : i32, i32
  }
}

module attributes {stable_mosaic.version = 11 : i64} {
  func.func @_fused_kernel(%arg0: i32, %arg1: memref<128x32xf32, #tpu.memory_space<vmem>>, %arg2: memref<32x32xf32, #tpu.memory_space<vmem>>, %arg3: memref<3x32xf32, #tpu.memory_space<vmem>>, %arg4: memref<128x32xf32, #tpu.memory_space<vmem>>) attributes {dimension_semantics = [#tpu.dimension_semantics<parallel>], iteration_bounds = array<i64: 4>, scalar_prefetch = 0 : i64, scratch_operands = 0 : i64, tpu.core_type = #tpu.core_type<tc>, window_params = [{transform_indices = @transform_0, window_bounds = array<i64: 128, 32>}, {pipeline_mode = #tpu.pipeline_mode<synchronous>, transform_indices = @transform_1, window_bounds = array<i64: 32, 32>}, {pipeline_mode = #tpu.pipeline_mode<synchronous>, transform_indices = @transform_2, window_bounds = array<i64: 3, 32>}, {transform_indices = @transform_3, window_bounds = array<i64: 128, 32>}]} {
    %c0 = arith.constant 0 : index
    %c0_0 = arith.constant 0 : index
    %0 = vector.load %arg1[%c0, %c0_0] : memref<128x32xf32, #tpu.memory_space<vmem>>, vector<128x32xf32>
    %c0_1 = arith.constant 0 : index
    %c0_2 = arith.constant 0 : index
    %1 = vector.load %arg2[%c0_1, %c0_2] : memref<32x32xf32, #tpu.memory_space<vmem>>, vector<32x32xf32>
    %cst = arith.constant dense<0.000000e+00> : vector<128x32xf32>
    %2 = tpu.matmul %0, %1, %cst {dimension_numbers = #tpu.dot_dimension_numbers<[1], [0], [0], [1], [0, 0, 1, 1], [], []>} : vector<128x32xf32>, vector<32x32xf32>, vector<128x32xf32> -> vector<128x32xf32>
    %c0_3 = arith.constant 0 : index
    %c0_4 = arith.constant 0 : index
    %3 = vector.load %arg3[%c0_3, %c0_4] : memref<3x32xf32, #tpu.memory_space<vmem>>, vector<1x32xf32>
    %4 = vector.broadcast %3 : vector<1x32xf32> to vector<128x32xf32>
    %5 = arith.addf %2, %4 : vector<128x32xf32>
    %cst_5 = arith.constant dense<0.000000e+00> : vector<128xf32>
    %6 = vector.multi_reduction <add>, %5, %cst_5 [1] : vector<128x32xf32> to vector<128xf32>
    %7 = vector.shape_cast %6 : vector<128xf32> to vector<128x1xf32>
    %cst_6 = arith.constant 3.200000e+01 : f32
    %8 = vector.broadcast %cst_6 : f32 to vector<128x1xf32>
    %9 = arith.divf %7, %8 : vector<128x1xf32>
    %10 = vector.broadcast %9 : vector<128x1xf32> to vector<128x32xf32>
    %11 = arith.subf %5, %10 : vector<128x32xf32>
    %12 = arith.mulf %11, %11 : vector<128x32xf32>
    %cst_7 = arith.constant dense<0.000000e+00> : vector<128xf32>
    %13 = vector.multi_reduction <add>, %12, %cst_7 [1] : vector<128x32xf32> to vector<128xf32>
    %14 = vector.shape_cast %13 : vector<128xf32> to vector<128x1xf32>
    %cst_8 = arith.constant 3.200000e+01 : f32
    %15 = vector.broadcast %cst_8 : f32 to vector<128x1xf32>
    %16 = arith.divf %14, %15 : vector<128x1xf32>
    %17 = vector.broadcast %9 : vector<128x1xf32> to vector<128x32xf32>
    %18 = arith.subf %5, %17 : vector<128x32xf32>
    %cst_9 = arith.constant 9.99999974E-6 : f32
    %19 = vector.broadcast %cst_9 : f32 to vector<128x1xf32>
    %20 = arith.addf %16, %19 : vector<128x1xf32>
    %21 = math.rsqrt %20 : vector<128x1xf32>
    %22 = vector.broadcast %21 : vector<128x1xf32> to vector<128x32xf32>
    %23 = arith.mulf %18, %22 : vector<128x32xf32>
    %c1 = arith.constant 1 : index
    %c0_10 = arith.constant 0 : index
    %24 = vector.load %arg3[%c1, %c0_10] : memref<3x32xf32, #tpu.memory_space<vmem>>, vector<1x32xf32>
    %25 = vector.broadcast %24 : vector<1x32xf32> to vector<128x32xf32>
    %26 = arith.mulf %23, %25 : vector<128x32xf32>
    %c2 = arith.constant 2 : index
    %c0_11 = arith.constant 0 : index
    %27 = vector.load %arg3[%c2, %c0_11] : memref<3x32xf32, #tpu.memory_space<vmem>>, vector<1x32xf32>
    %28 = vector.broadcast %27 : vector<1x32xf32> to vector<128x32xf32>
    %29 = arith.addf %26, %28 : vector<128x32xf32>
    %c0_12 = arith.constant 0 : index
    %c0_13 = arith.constant 0 : index
    %30 = vector.load %arg4[%c0_12, %c0_13] : memref<128x32xf32, #tpu.memory_space<vmem>>, vector<128x32xf32>
    tpu.vector_store %arg4[%c0_12, %c0_13], %29 {strides = array<i32>} : memref<128x32xf32, #tpu.memory_space<vmem>>, vector<128x32xf32>,
    return
  }
  func.func @transform_0(%arg0: i32) -> (i32, i32) {
    %c0_i32 = arith.constant 0 : i32
    %c0_i32_0 = arith.constant 0 : i32
    return %arg0, %c0_i32 : i32, i32
  }
  func.func @transform_1(%arg0: i32) -> (i32, i32) {
    %c0_i32 = arith.constant 0 : i32
    %c0_i32_0 = arith.constant 0 : i32
    %c0_i32_1 = arith.constant 0 : i32
    return %c0_i32, %c0_i32_0 : i32, i32
  }
  func.func @transform_2(%arg0: i32) -> (i32, i32) {
    %c0_i32 = arith.constant 0 : i32
    %c0_i32_0 = arith.constant 0 : i32
    %c0_i32_1 = arith.constant 0 : i32
    return %c0_i32, %c0_i32_0 : i32, i32
  }
  func.func @transform_3(%arg0: i32) -> (i32, i32) {
    %c0_i32 = arith.constant 0 : i32
    %c0_i32_0 = arith.constant 0 : i32
    return %arg0, %c0_i32 : i32, i32
  }
}

</mosaic_0001>

<bundles_post_ra>
// kernel: patch_embed_forward.1
= control target key start
LH: loop header
LB: loop body
LE: loop exit
PB: predicated region body
PF: predicated region fallthrough
CT: control target
= control target key end

     0   :  { %8 = vsyncpa [#allocation3], 0  ;;  %s1394_s0 = inlined_call_operand.vmem [shape: f32[512,32], index: 0, kind: input, shape index: {}]   ;;  %s1395_s1 = inlined_call_operand.vmem [shape: f32[32,32], index: 1, kind: input, shape index: {}]   ;;  %s1396_s2 = inlined_call_operand.vmem [shape: f32[3,32], index: 2, kind: input, shape index: {}]   ;;  %s1397_s3 = inlined_call_operand.hbm [shape: f32[512,32], index: 3, kind: output, shape index: {}]  }
   0x1   :  { %10 = vsyncpa [#allocation3 + $0x1], 0  ;;  %s990_s12 = smov 0   ;;  %s992_s13 = smov 0  }
   0x2   :  { %s994_s14 = smov 0   ;;  %s996_s15 = smov 0  }
   0x3 LB: > { %s1011_s16 = sadd.s32 4294967295, %s965_s15   ;;  %s734_s17 = sadd.s32 4294967294, %s965_s15   ;;  %s965_s15 = sphi %s996_s15, %s1403_s15   ;;  %s961_s14 = sphi %s994_s14, %s1402_s14   ;;  %s957_s13 = sphi %s992_s13, %s1401_s13   ;;  %s953_s12 = sphi %s990_s12, %s1400_s12  }
   0x4   : > { %s1015_s18 = sadd.s32 1, %s965_s15   ;;  %s91_s19 = sadd.s32 1, %s961_s14 }
   0x5   : > { %s88_s20 = ssub.s32 %s965_s15, %s1015_s18  ;;  %p101_p0 = scmp.ne.s32.totalorder %s961_s14, %s957_s13 }
   0x6   : > { %p89_p1 = scmp.eq.s32.totalorder %s88_s20, 0  ;;  %p102_p2 = scmp.eq.s32.totalorder %s1011_s16, 3 }
   0x7   : > { %p107_p3 = scmp.ne.s32.totalorder %s957_s13, %s953_s12  ;;  %p108_p4 = scmp.eq.s32.totalorder %s734_s17, 3 }
   0x8   : > { %s1026_s21 = scalar_select %p89_p1, %s961_s14, %s91_s19  }
   0x9   : > { %p1028_p5 = por %p102_p2, %p101_p0  ;;  %p1032_p6 = por %p108_p4, %p107_p3 }
   0xa   : > { %p737_p7 = scmp.ge.s32.totalorder %s965_s15, 1  ;;  %p141_p8 = scmp.lt.s32.totalorder %s965_s15, 5 }
   0xc   : > { %p142_p9 = pnand %p737_p7, %p141_p8 }
   0xd   : > { %v188_v0 = vld [vmem:[%s1395_s1] sm:$0xff] (!%p142_p9)  ;;  %v189_v1 = vld [vmem:[%s1395_s1 + $0x8] sm:$0xff] (!%p142_p9)  ;;  %v190_v2 = vld [vmem:[%s1395_s1 + $0x10] sm:$0xff] (!%p142_p9)  ;;  %s739_s30 = sshll.u32 (!%p142_p9), %s1011_s16, 4  ;;  %vm197_vm0 = vcmask (!%p142_p9), 261120   ;;  %s162_s17 = sand.u32 (!%p142_p9), 1, %s957_s13  }
   0xe   : > { %145 = sbr.rel (%p142_p9) target bundleno = 601 (0x259), region = 32  ;;  %v818_v3 = vpack.c.bf16 (!%p142_p9), %v189_v1, %v188_v0  ;;  %v191_v4 = vld [vmem:[%s1395_s1 + $0x18] sm:$0xff] (!%p142_p9)  ;;  %p166_p10 = scmp.lt.s32.totalorder (!%p142_p9), %s739_s30, 63  ;;  %v741_v22 = vld [vmem:[%s1396_s2] ss:$0 sm:$0xff] (!%p142_p9) }
   0xf   : > { %v822_v5 = vpack.c.bf16 (!%p142_p9), %v191_v4, %v190_v2  ;;  %s738_s24 = sshll.u32 (!%p142_p9), %s162_s17, 7  ;;  %s765_s28 = sshll.u32 (!%p142_p9), %s1011_s16, 11 }
  0x10   : > { %819 = vmatprep.subr.bf16.mxu0 (!%p142_p9), %v818_v3  ;;  %826 = vmatprep.subr.bf16.mxu1 (!%p142_p9), %v818_v3  ;;  %s1265_s27 = scalar_lea.vmem (!%p142_p9), [#allocation2], %s738_s24  ;;  %s1344_s5 = scalar_lea.hbm (!%p142_p9), %s1397_s3, %s765_s28 }
  0x11   : > { %821 = vmatpush3.bf16.msra.mxu0 (!%p142_p9), %v818_v3  ;;  %828 = vmatpush3.bf16.msra.mxu1 (!%p142_p9), %v818_v3  ;;  %s672_s29 = sshll.u32 (!%p142_p9), %s1265_s27, 4  ;;  %s1353_s16 = scalar_lea.sflag (!%p142_p9), [#allocation3], %s162_s17  ;;  %s1346_s29 = int_to_ptr.vmem [resolvable:$true] %s672_s29 }
  0x12   : > { %823 = vmatprep.subr.bf16.mxu0 (!%p142_p9), %v822_v5  ;;  %827 = vmatprep.subr.bf16.mxu1 (!%p142_p9), %v822_v5  ;;  %s967_s7 = smov (!%p142_p9), [#allocation2]  }
  0x13   : > { %s907_s8 = sshll.u32 (!%p142_p9), %s967_s7, 4  ;;  %s908_s8 = int_to_ptr.vmem [resolvable:$false] %s907_s8 }
  0x14   : > { %p910_p0 = scmp.lt.s32.totalorder (!%p142_p9), %s1346_s29, %s908_s8 }
  0x15   : > { %s1405_s30 = smov (!%p166_p10, %s739_s30), 63  ;;  %825 = vmatpush3.bf16.msra.mxu0 %v822_v5  ;;  %829 = vmatpush3.bf16.msra.mxu1 %v822_v5 }
  0x16   : > { %s740_s6 = sshll.u32 %s1405_s30, 3 }
  0x17   : > { %s1054_s9 = scalar_lea.vmem %s1394_s0, %s740_s6  ;;  %s903_s6 = scalar_lea.vmem %s1346_s29, 2048 }
  0x18   : > { %v172_v6 = vld [vmem:[%s1054_s9] sm:$0xff]  ;;  %v173_v8 = vld [vmem:[%s1054_s9 + $0x8] sm:$0xff]  ;;  %v174_v10 = vld [vmem:[%s1054_s9 + $0x10] sm:$0xff]  ;;  %p904_p11 = scmp.ne.s32.totalorder %s1346_s29, %s903_s6 }
  0x19   : > { %v180_v7 = vld [vmem:[%s1054_s9 + $0x40] sm:$0xff]  ;;  %v181_v9 = vld [vmem:[%s1054_s9 + $0x48] sm:$0xff]  ;;  %794 = vmatprep.mubr.msk.f32.mxu0 %vm197_vm0, %v172_v6  ;;  %v182_v11 = vld [vmem:[%s1054_s9 + $0x50] sm:$0xff] }
  0x1a   : > { %806 = vmatprep.mubr.msk.f32.mxu1 %vm197_vm0, %v180_v7  ;;  %795 = vmatmul.mubr.msk.f32.vlgmr.msra.gmra.mrb[0].mxu0 %vm197_vm0, %v173_v8  ;;  %v175_v12 = vld [vmem:[%s1054_s9 + $0x18] sm:$0xff]  ;;  %v176_v14 = vld [vmem:[%s1054_s9 + $0x20] sm:$0xff]  ;;  %v177_v16 = vld [vmem:[%s1054_s9 + $0x28] sm:$0xff]  ;;  %p905_p12 = pnand %p904_p11, %p1028_p5 }
  0x1b   : > { %807 = vmatmul.mubr.msk.f32.vlgmr.msra.gmra.mrb[0].mxu1 %vm197_vm0, %v181_v9  ;;  %797 = vmatprep.mubr.msk.f32.mxu0 %vm197_vm0, %v174_v10  ;;  %v183_v13 = vld [vmem:[%s1054_s9 + $0x58] sm:$0xff]  ;;  %v184_v15 = vld [vmem:[%s1054_s9 + $0x60] sm:$0xff]  ;;  %v185_v17 = vld [vmem:[%s1054_s9 + $0x68] sm:$0xff] }
  0x1c   : > { %809 = vmatprep.mubr.msk.f32.mxu1 %vm197_vm0, %v182_v11  ;;  %v178_v18 = vld [vmem:[%s1054_s9 + $0x30] sm:$0xff]  ;;  %v179_v20 = vld [vmem:[%s1054_s9 + $0x38] sm:$0xff]  ;;  %p906_p13 = pneg %p905_p12 }
  0x1d   : > { %v186_v19 = vld [vmem:[%s1054_s9 + $0x70] sm:$0xff]  ;;  %v187_v21 = vld [vmem:[%s1054_s9 + $0x78] sm:$0xff]  ;;  %s909_s9 = scalar_lea.vmem %s908_s8, 4096 }
  0x1e   : > { %798 = vmatmul.mubr.msk.f32.gmra.mrb[2].mxu0 %vm197_vm0, %v175_v12  ;;  %p911_p1 = scmp.lt.s32.totalorder %s909_s9, %s903_s6 }
  0x1f   : > { %810 = vmatmul.mubr.msk.f32.gmra.mrb[2].mxu1 %vm197_vm0, %v183_v13  ;;  %800 = vmatprep.mubr.msk.f32.mxu0 %vm197_vm0, %v176_v14 }
  0x20   : > { %812 = vmatprep.mubr.msk.f32.mxu1 %vm197_vm0, %v184_v15  ;;  %p912_p2 = por %p911_p1, %p910_p0 }
  0x22   : > { %801 = vmatmul.mubr.msk.f32.gmra.mrb[4].mxu0 %vm197_vm0, %v177_v16  ;;  %p913_p3 = pnand %p912_p2, %p906_p13 }
  0x23   : > { %813 = vmatmul.mubr.msk.f32.gmra.mrb[4].mxu1 %vm197_vm0, %v185_v17  ;;  %803 = vmatprep.mubr.msk.f32.mxu0 %vm197_vm0, %v178_v18 }
  0x24   : > { %815 = vmatprep.mubr.msk.f32.mxu1 %vm197_vm0, %v186_v19 }
  0x26   : > { %804 = vmatmul.mubr.msk.f32.gmra.mrb[6].mxu0 %vm197_vm0, %v179_v20 }
  0x27   : > { %816 = vmatmul.mubr.msk.f32.gmra.mrb[6].mxu1 %vm197_vm0, %v187_v21 }
  0xed   : > { %v796_v23 = vpop.f32.mrb[0].mxu0 }
  0xee   : > { %v808_v24 = vpop.f32.mrb[0].mxu1  ;;  %v1091_v25 = vadd.f32 %v796_v23, %v741_v22  ;;  %v312_v27 = vpop.f32.mrb[1].mxu0 }
  0xef   : > { %v1093_v26 = vadd.f32 %v808_v24, %v741_v22  ;;  %v352_v28 = vpop.f32.mrb[1].mxu1  ;;  %v1095_v29 = vadd.f32 %v741_v22, %v312_v27 }
  0xf0   : > { %v394_v31 = vsel %vm197_vm0, %v1091_v25, 0.0  ;;  %v1103_v38 = vadd.f32 %v741_v22, %v352_v28 }
  0xf1   : > { %v418_v30 = vsel %vm197_vm0, %v1093_v26, 0.0  ;;  %395 = vadd.xlane.f32.xlu0 %v394_v31  ;;  %v799_v32 = vpop.f32.mrb[2].mxu0  ;;  %v391_v40 = vsel %vm197_vm0, %v1095_v29, 0.0 }
  0xf2   : > { %419 = vadd.xlane.f32.xlu1 %v418_v30  ;;  %v811_v33 = vpop.f32.mrb[2].mxu1  ;;  %v328_v34 = vadd.f32 %v799_v32, %v741_v22  ;;  %v322_v35 = vpop.f32.mrb[3].mxu0  ;;  %v415_v48 = vsel %vm197_vm0, %v1103_v38, 0.0 }
  0xf3   : > { %v1101_v36 = vadd.f32 %v811_v33, %v741_v22  ;;  %v362_v37 = vpop.f32.mrb[3].mxu1  ;;  %v1110_v46 = vadd.f32 %v741_v22, %v322_v35 }
  0xf4   : > { %v400_v39 = vsel %vm197_vm0, %v328_v34, 0.0  ;;  %v1112_v47 = vadd.f32 %v741_v22, %v362_v37 }
  0xf5   : > { %392 = vadd.xlane.f32.xlu0 %v391_v40  ;;  %v802_v41 = vpop.f32.mrb[4].mxu0  ;;  %v424_v43 = vsel %vm197_vm0, %v1101_v36, 0.0  ;;  %v397_v55 = vsel %vm197_vm0, %v1110_v46, 0.0 }
  0xf6   : > { %401 = vadd.xlane.f32.xlu1 %v400_v39  ;;  %v814_v42 = vpop.f32.mrb[4].mxu1  ;;  %v332_v44 = vpop.f32.mrb[5].mxu0  ;;  %v1116_v51 = vadd.f32 %v802_v41, %v741_v22  ;;  %v421_v56 = vsel %vm197_vm0, %v1112_v47, 0.0 }
  0xf7   : > { %v372_v45 = vpop.f32.mrb[5].mxu1  ;;  %v1118_v52 = vadd.f32 %v741_v22, %v332_v44  ;;  %v1124_v57 = vadd.f32 %v814_v42, %v741_v22 }
  0xf8   : > { %v1126_v58 = vadd.f32 %v741_v22, %v372_v45  ;;  %v406_v59 = vsel %vm197_vm0, %v1116_v51, 0.0 }
  0xf9   : > { %416 = vadd.xlane.f32.xlu0 %v415_v48  ;;  %v805_v49 = vpop.f32.mrb[6].mxu0  ;;  %v403_v60 = vsel %vm197_vm0, %v1118_v52, 0.0  ;;  %v430_v63 = vsel %vm197_vm0, %v1124_v57, 0.0 }
  0xfa   : > { %425 = vadd.xlane.f32.xlu1 %v424_v43  ;;  %v817_v50 = vpop.f32.mrb[6].mxu1  ;;  %v342_v53 = vpop.f32.mrb[7].mxu0  ;;  %v1132_v61 = vadd.f32 %v805_v49, %v741_v22  ;;  %v427_v0 = vsel %vm197_vm0, %v1126_v58, 0.0 }
  0xfb   : > { %v382_v54 = vpop.f32.mrb[7].mxu1  ;;  %v1134_v62 = vadd.f32 %v741_v22, %v342_v53  ;;  %v1140_v1 = vadd.f32 %v817_v50, %v741_v22 }
  0xfc   : > { %v1142_v2 = vadd.f32 %v741_v22, %v382_v54  ;;  %v412_v3 = vsel %vm197_vm0, %v1132_v61, 0.0 }
  0xfd   : > { %422 = vadd.xlane.f32.xlu0 %v421_v56  ;;  %v409_v4 = vsel %vm197_vm0, %v1134_v62, 0.0  ;;  %v436_v5 = vsel %vm197_vm0, %v1140_v1, 0.0 }
  0xfe   : > { %398 = vadd.xlane.f32.xlu1 %v397_v55  ;;  %v433_v6 = vsel %vm197_vm0, %v1142_v2, 0.0 }
 0x101   : > { %404 = vadd.xlane.f32.xlu0 %v403_v60 }
 0x102   : > { %407 = vadd.xlane.f32.xlu1 %v406_v59 }
 0x105   : > { %428 = vadd.xlane.f32.xlu0 %v427_v0 }
 0x106   : > { %431 = vadd.xlane.f32.xlu1 %v430_v63 }
 0x109   : > { %410 = vadd.xlane.f32.xlu0 %v409_v4 }
 0x10a   : > { %413 = vadd.xlane.f32.xlu1 %v412_v3 }
 0x10d   : > { %434 = vadd.xlane.f32.xlu0 %v433_v6 }
 0x10e   : > { %437 = vadd.xlane.f32.xlu1 %v436_v5 }
 0x17e   : > { %v396_v8 = vpop.xlane.xlu0 %395 }
 0x17f   : > { %v420_v7 = vpop.xlane.xlu1 %419  ;;  %v441_v10 = vmul.f32 0.03125, %v396_v8 }
 0x180   : > { %v449_v9 = vmul.f32 0.03125, %v420_v7 }
 0x181   : > { %v1156_v12 = vsub.f32 %v1091_v25, %v441_v10 }
 0x182   : > { %v1153_v11 = vsub.f32 %v1093_v26, %v449_v9  ;;  %v393_v14 = vpop.xlane.xlu0 %392 }
 0x183   : > { %v402_v13 = vpop.xlane.xlu1 %401  ;;  %v440_v16 = vmul.f32 0.03125, %v393_v14  ;;  %v473_v17 = vmul.f32 %v1156_v12, %v1156_v12 }
 0x184   : > { %v443_v15 = vmul.f32 0.03125, %v402_v13  ;;  %v481_v21 = vmul.f32 %v1153_v11, %v1153_v11 }
 0x185   : > { %v1163_v19 = vsub.f32 %v1095_v29, %v440_v16  ;;  %v491_v20 = vsel %vm197_vm0, %v473_v17, 0.0 }
 0x186   : > { %v1160_v18 = vsub.f32 %v328_v34, %v443_v15  ;;  %492 = vadd.xlane.f32.xlu1 %v491_v20  ;;  %v417_v23 = vpop.xlane.xlu0 %416  ;;  %v515_v30 = vsel %vm197_vm0, %v481_v21, 0.0 }
 0x187   : > { %v426_v22 = vpop.xlane.xlu1 %425  ;;  %v448_v25 = vmul.f32 0.03125, %v417_v23  ;;  %v472_v26 = vmul.f32 %v1163_v19, %v1163_v19 }
 0x188   : > { %v451_v24 = vmul.f32 0.03125, %v426_v22  ;;  %v475_v27 = vmul.f32 %v1160_v18, %v1160_v18 }
 0x189   : > { %v1176_v29 = vsub.f32 %v1103_v38, %v448_v25  ;;  %v488_v31 = vsel %vm197_vm0, %v472_v26, 0.0 }
 0x18a   : > { %v1173_v28 = vsub.f32 %v1101_v36, %v451_v24  ;;  %516 = vadd.xlane.f32.xlu1 %v515_v30  ;;  %489 = vadd.xlane.f32.xlu0 %v488_v31  ;;  %v423_v33 = vpop.xlane.xlu0 %422  ;;  %v497_v39 = vsel %vm197_vm0, %v475_v27, 0.0 }
 0x18b   : > { %v399_v32 = vpop.xlane.xlu1 %398  ;;  %v450_v35 = vmul.f32 0.03125, %v423_v33  ;;  %v480_v37 = vmul.f32 %v1176_v29, %v1176_v29 }
 0x18c   : > { %v442_v34 = vmul.f32 0.03125, %v399_v32  ;;  %v483_v41 = vmul.f32 %v1173_v28, %v1173_v28 }
 0x18d   : > { %v1187_v38 = vsub.f32 %v1112_v47, %v450_v35  ;;  %v512_v40 = vsel %vm197_vm0, %v480_v37, 0.0 }
 0x18e   : > { %v1184_v36 = vsub.f32 %v1110_v46, %v442_v34  ;;  %498 = vadd.xlane.f32.xlu1 %v497_v39  ;;  %513 = vadd.xlane.f32.xlu0 %v512_v40  ;;  %v405_v43 = vpop.xlane.xlu0 %404  ;;  %v521_v50 = vsel %vm197_vm0, %v483_v41, 0.0 }
 0x18f   : > { %v408_v42 = vpop.xlane.xlu1 %407  ;;  %v444_v45 = vmul.f32 0.03125, %v405_v43  ;;  %v482_v46 = vmul.f32 %v1187_v38, %v1187_v38 }
 0x190   : > { %v445_v44 = vmul.f32 0.03125, %v408_v42  ;;  %v474_v48 = vmul.f32 %v1184_v36, %v1184_v36 }
 0x191   : > { %v1200_v49 = vsub.f32 %v1118_v52, %v444_v45  ;;  %v518_v63 = vsel %vm197_vm0, %v482_v46, 0.0 }
 0x192   : > { %v1197_v47 = vsub.f32 %v1116_v51, %v445_v44  ;;  %v494_v53 = vsel %vm197_vm0, %v474_v48, 0.0  ;;  %522 = vadd.xlane.f32.xlu1 %v521_v50  ;;  %v429_v55 = vpop.xlane.xlu0 %428 }
 0x193   : > { %v432_v54 = vpop.xlane.xlu1 %431  ;;  %495 = vadd.xlane.f32.xlu0 %v494_v53  ;;  %v452_v59 = vmul.f32 0.03125, %v429_v55  ;;  %v476_v3 = vmul.f32 %v1200_v49, %v1200_v49  ;;  %v1251_v55 = vld [vmem:[%s1396_s2 + $0x1] ss:$0 sm:$0xff] }
 0x194   : > { %v453_v56 = vmul.f32 0.03125, %v432_v54  ;;  %v477_v60 = vmul.f32 %v1197_v47, %v1197_v47 }
 0x195   : > { %v1211_v52 = vsub.f32 %v1126_v58, %v452_v59  ;;  %v500_v13 = vsel %vm197_vm0, %v476_v3, 0.0  ;;  %v1259_v3 = vld [vmem:[%s1396_s2 + $0x2] ss:$0 sm:$0xff] }
 0x196   : > { %v1208_v51 = vsub.f32 %v1124_v57, %v453_v56  ;;  %v503_v0 = vsel %vm197_vm0, %v477_v60, 0.0  ;;  %v411_v5 = vpop.xlane.xlu0 %410 }
 0x197   : > { %504 = vadd.xlane.f32.xlu1 %v503_v0  ;;  %v414_v4 = vpop.xlane.xlu1 %413  ;;  %519 = vadd.xlane.f32.xlu0 %v518_v63  ;;  %v446_v7 = vmul.f32 0.03125, %v411_v5  ;;  %v484_v57 = vmul.f32 %v1211_v52, %v1211_v52 }
 0x198   : > { %v447_v6 = vmul.f32 0.03125, %v414_v4  ;;  %v485_v8 = vmul.f32 %v1208_v51, %v1208_v51 }
 0x199   : > { %v1224_v9 = vsub.f32 %v1134_v62, %v446_v7  ;;  %v524_v21 = vsel %vm197_vm0, %v484_v57, 0.0 }
 0x19a   : > { %v1221_v58 = vsub.f32 %v1132_v61, %v447_v6  ;;  %v527_v10 = vsel %vm197_vm0, %v485_v8, 0.0  ;;  %v435_v15 = vpop.xlane.xlu0 %434 }
 0x19b   : > { %528 = vadd.xlane.f32.xlu1 %v527_v10  ;;  %v438_v14 = vpop.xlane.xlu1 %437  ;;  %501 = vadd.xlane.f32.xlu0 %v500_v13  ;;  %v454_v17 = vmul.f32 0.03125, %v435_v15  ;;  %v478_v23 = vmul.f32 %v1224_v9, %v1224_v9 }
 0x19c   : > { %v455_v16 = vmul.f32 0.03125, %v438_v14  ;;  %v479_v20 = vmul.f32 %v1221_v58, %v1221_v58 }
 0x19d   : > { %v1235_v62 = vsub.f32 %v1142_v2, %v454_v17  ;;  %v506_v26 = vsel %vm197_vm0, %v478_v23, 0.0 }
 0x19e   : > { %v1232_v61 = vsub.f32 %v1140_v1, %v455_v16  ;;  %v509_v22 = vsel %vm197_vm0, %v479_v20, 0.0 }
 0x19f   : > { %510 = vadd.xlane.f32.xlu1 %v509_v22  ;;  %525 = vadd.xlane.f32.xlu0 %v524_v21  ;;  %v486_v1 = vmul.f32 %v1235_v62, %v1235_v62 }
 0x1a0   : > { %v487_v24 = vmul.f32 %v1232_v61, %v1232_v61 }
 0x1a1   : > { %v530_v2 = vsel %vm197_vm0, %v486_v1, 0.0 }
 0x1a2   : > { %v533_v25 = vsel %vm197_vm0, %v487_v24, 0.0 }
 0x1a3   : > { %534 = vadd.xlane.f32.xlu1 %v533_v25  ;;  %507 = vadd.xlane.f32.xlu0 %v506_v26 }
 0x1a7   : > { %531 = vadd.xlane.f32.xlu0 %v530_v2 }
 0x213   : > { %v493_v27 = vpop.xlane.xlu1 %492 }
 0x214   : > { %v537_v30 = vmul.f32 0.03125, %v493_v27 }
 0x216   : > { %v553_v31 = vadd.f32 1e-05, %v537_v30 }
 0x217   : > { %v517_v32 = vpop.xlane.xlu1 %516  ;;  %v490_v33 = vpop.xlane.xlu0 %489 }
 0x218   : > { %871 = vrsqrt.f32 %v553_v31  ;;  %v545_v34 = vmul.f32 0.03125, %v517_v32  ;;  %v536_v35 = vmul.f32 0.03125, %v490_v33 }
 0x21a   : > { %v561_v37 = vadd.f32 1e-05, %v545_v34  ;;  %v552_v39 = vadd.f32 1e-05, %v536_v35 }
 0x21b   : > { %v499_v40 = vpop.xlane.xlu1 %498  ;;  %v514_v41 = vpop.xlane.xlu0 %513 }
 0x21c   : > { %873 = vrsqrt.f32 %v561_v37  ;;  %v539_v42 = vmul.f32 0.03125, %v499_v40  ;;  %v544_v43 = vmul.f32 0.03125, %v514_v41 }
 0x21d   : > { %875 = vrsqrt.f32 %v552_v39 }
 0x21e   : > { %v555_v44 = vadd.f32 1e-05, %v539_v42  ;;  %v560_v45 = vadd.f32 1e-05, %v544_v43 }
 0x21f   : > { %v523_v48 = vpop.xlane.xlu1 %522 }
 0x220   : > { %v496_v46 = vpop.xlane.xlu0 %495  ;;  %877 = vrsqrt.f32 %v555_v44  ;;  %v547_v50 = vmul.f32 0.03125, %v523_v48 }
 0x221   : > { %v538_v53 = vmul.f32 0.03125, %v496_v46  ;;  %879 = vrsqrt.f32 %v560_v45 }
 0x222   : > { %v872_v54 = vpop.eup %871  ;;  %v563_v56 = vadd.f32 1e-05, %v547_v50 }
 0x223   : > { %v554_v59 = vadd.f32 1e-05, %v538_v53  ;;  %v585_v60 = vmul.f32 %v872_v54, %v1156_v12 }
 0x224   : > { %v505_v63 = vpop.xlane.xlu1 %504  ;;  %v520_v0 = vpop.xlane.xlu0 %519  ;;  %881 = vrsqrt.f32 %v563_v56 }
 0x225   : > { %v541_v4 = vmul.f32 0.03125, %v505_v63  ;;  %v546_v5 = vmul.f32 0.03125, %v520_v0  ;;  %v606_v6 = vmul.f32 %v1251_v55, %v585_v60  ;;  %883 = vrsqrt.f32 %v554_v59 }
 0x226   : > { %v874_v7 = vpop.eup %873 }
 0x227   : > { %v557_v8 = vadd.f32 1e-05, %v541_v4  ;;  %v562_v57 = vadd.f32 1e-05, %v546_v5  ;;  %v876_v10 = vpop.eup %875  ;;  %v627_v13 = vadd.f32 %v1259_v3, %v606_v6  ;;  %v593_v12 = vmul.f32 %v874_v7, %v1153_v11 }
 0x228   : > { %v529_v14 = vpop.xlane.xlu1 %528  ;;  %v502_v15 = vpop.xlane.xlu0 %501  ;;  %v584_v16 = vmul.f32 %v876_v10, %v1163_v19 }
 0x229   : > { %885 = vrsqrt.f32 %v557_v8  ;;  %v549_v17 = vmul.f32 0.03125, %v529_v14  ;;  %v540_v20 = vmul.f32 0.03125, %v502_v15  ;;  %643 = vst.msk [vmem:[%s1265_s27 + $0x8] sm:$0xff] %vm197_vm0, %v627_v13  ;;  %v614_v21 = vmul.f32 %v1251_v55, %v593_v12 }
 0x22a   : > { %887 = vrsqrt.f32 %v562_v57  ;;  %v878_v22 = vpop.eup %877  ;;  %v605_v23 = vmul.f32 %v1251_v55, %v584_v16 }
 0x22b   : > { %v565_v11 = vadd.f32 1e-05, %v549_v17  ;;  %v556_v24 = vadd.f32 1e-05, %v540_v20  ;;  %v880_v25 = vpop.eup %879  ;;  %v635_v19 = vadd.f32 %v1259_v3, %v614_v21  ;;  %v587_v26 = vmul.f32 %v878_v22, %v1160_v18 }
 0x22c   : > { %v511_v1 = vpop.xlane.xlu1 %510  ;;  %v526_v2 = vpop.xlane.xlu0 %525  ;;  %v626_v27 = vadd.f32 %v1259_v3, %v605_v23  ;;  %v592_v30 = vmul.f32 %v880_v25, %v1176_v29 }
 0x22d   : > { %889 = vrsqrt.f32 %v565_v11  ;;  %v543_v31 = vmul.f32 0.03125, %v511_v1  ;;  %651 = vst.msk [vmem:[%s1265_s27 + $0x48] sm:$0xff] %vm197_vm0, %v635_v19  ;;  %v608_v32 = vmul.f32 %v1251_v55, %v587_v26  ;;  %v548_v33 = vmul.f32 0.03125, %v526_v2 }
 0x22e   : > { %891 = vrsqrt.f32 %v556_v24  ;;  %v882_v34 = vpop.eup %881  ;;  %642 = vst.msk [vmem:[%s1265_s27] sm:$0xff] %vm197_vm0, %v626_v27  ;;  %v613_v18 = vmul.f32 %v1251_v55, %v592_v30 }
 0x22f   : > { %v559_v35 = vadd.f32 1e-05, %v543_v31  ;;  %v884_v37 = vpop.eup %883  ;;  %v629_v39 = vadd.f32 %v1259_v3, %v608_v32  ;;  %v595_v29 = vmul.f32 %v882_v34, %v1173_v28  ;;  %v564_v40 = vadd.f32 1e-05, %v548_v33 }
 0x230   : > { %v535_v41 = vpop.xlane.xlu1 %534  ;;  %v508_v42 = vpop.xlane.xlu0 %507  ;;  %v634_v43 = vadd.f32 %v1259_v3, %v613_v18  ;;  %v586_v44 = vmul.f32 %v884_v37, %v1184_v36 }
 0x231   : > { %893 = vrsqrt.f32 %v559_v35  ;;  %v551_v45 = vmul.f32 0.03125, %v535_v41  ;;  %645 = vst.msk [vmem:[%s1265_s27 + $0x18] sm:$0xff] %vm197_vm0, %v629_v39  ;;  %v616_v48 = vmul.f32 %v1251_v55, %v595_v29  ;;  %v542_v46 = vmul.f32 0.03125, %v508_v42 }
 0x232   : > { %895 = vrsqrt.f32 %v564_v40  ;;  %650 = vst.msk [vmem:[%s1265_s27 + $0x40] sm:$0xff] %vm197_vm0, %v634_v43  ;;  %v607_v28 = vmul.f32 %v1251_v55, %v586_v44 }
 0x233   : > { %v886_v50 = vpop.eup %885  ;;  %v567_v53 = vadd.f32 1e-05, %v551_v45  ;;  %v637_v56 = vadd.f32 %v1259_v3, %v616_v48  ;;  %v558_v59 = vadd.f32 1e-05, %v542_v46 }
 0x234   : > { %v888_v54 = vpop.eup %887  ;;  %v589_v36 = vmul.f32 %v886_v50, %v1197_v47  ;;  %v532_v60 = vpop.xlane.xlu0 %531  ;;  %v628_v63 = vadd.f32 %v1259_v3, %v607_v28 }
 0x235   : > { %v594_v0 = vmul.f32 %v888_v54, %v1187_v38  ;;  %897 = vrsqrt.f32 %v567_v53  ;;  %v550_v4 = vmul.f32 0.03125, %v532_v60  ;;  %653 = vst.msk [vmem:[%s1265_s27 + $0x58] sm:$0xff] %vm197_vm0, %v637_v56 }
 0x236   : > { %v610_v5 = vmul.f32 %v1251_v55, %v589_v36  ;;  %899 = vrsqrt.f32 %v558_v59  ;;  %644 = vst.msk [vmem:[%s1265_s27 + $0x10] sm:$0xff] %vm197_vm0, %v628_v63 }
 0x237   : > { %v890_v6 = vpop.eup %889  ;;  %v615_v47 = vmul.f32 %v1251_v55, %v594_v0  ;;  %v566_v7 = vadd.f32 1e-05, %v550_v4 }
 0x238   : > { %v892_v8 = vpop.eup %891  ;;  %v631_v57 = vadd.f32 %v1259_v3, %v610_v5  ;;  %v597_v38 = vmul.f32 %v890_v6, %v1208_v51 }
 0x239   : > { %v636_v10 = vadd.f32 %v1259_v3, %v615_v47  ;;  %v588_v13 = vmul.f32 %v892_v8, %v1200_v49  ;;  %901 = vrsqrt.f32 %v566_v7 }
 0x23a   : > { %647 = vst.msk [vmem:[%s1265_s27 + $0x28] sm:$0xff] %vm197_vm0, %v631_v57  ;;  %v618_v12 = vmul.f32 %v1251_v55, %v597_v38 }
 0x23b   : > { %v894_v14 = vpop.eup %893  ;;  %652 = vst.msk [vmem:[%s1265_s27 + $0x50] sm:$0xff] %vm197_vm0, %v636_v10  ;;  %v609_v15 = vmul.f32 %v1251_v55, %v588_v13 }
 0x23c   : > { %v896_v16 = vpop.eup %895  ;;  %v639_v17 = vadd.f32 %v1259_v3, %v618_v12  ;;  %v591_v51 = vmul.f32 %v894_v14, %v1221_v58 }
 0x23d   : > { %v630_v20 = vadd.f32 %v1259_v3, %v609_v15  ;;  %v596_v49 = vmul.f32 %v896_v16, %v1211_v52 }
 0x23e   : > { %655 = vst.msk [vmem:[%s1265_s27 + $0x68] sm:$0xff] %vm197_vm0, %v639_v17  ;;  %v612_v21 = vmul.f32 %v1251_v55, %v591_v51 }
 0x23f   : > { %v898_v22 = vpop.eup %897  ;;  %646 = vst.msk [vmem:[%s1265_s27 + $0x20] sm:$0xff] %vm197_vm0, %v630_v20  ;;  %v617_v23 = vmul.f32 %v1251_v55, %v596_v49 }
 0x240   : > { %v900_v11 = vpop.eup %899  ;;  %v633_v58 = vadd.f32 %v1259_v3, %v612_v21  ;;  %v599_v24 = vmul.f32 %v898_v22, %v1232_v61 }
 0x241   : > { %v638_v52 = vadd.f32 %v1259_v3, %v617_v23  ;;  %v590_v25 = vmul.f32 %v900_v11, %v1224_v9 }
 0x242   : > { %649 = vst.msk [vmem:[%s1265_s27 + $0x38] sm:$0xff] %vm197_vm0, %v633_v58  ;;  %v620_v19 = vmul.f32 %v1251_v55, %v599_v24 }
 0x243   : > { %v902_v26 = vpop.eup %901  ;;  %654 = vst.msk [vmem:[%s1265_s27 + $0x60] sm:$0xff] %vm197_vm0, %v638_v52  ;;  %v611_v1 = vmul.f32 %v1251_v55, %v590_v25 }
 0x244   : > { %v641_v2 = vadd.f32 %v1259_v3, %v620_v19  ;;  %v598_v61 = vmul.f32 %v902_v26, %v1235_v62 }
 0x245   : > { %v632_v9 = vadd.f32 %v1259_v3, %v611_v1 }
 0x246   : > { %657 = vst.msk [vmem:[%s1265_s27 + $0x78] sm:$0xff] %vm197_vm0, %v641_v2  ;;  %v619_v27 = vmul.f32 %v1251_v55, %v598_v61 }
 0x247   : > { %648 = vst.msk [vmem:[%s1265_s27 + $0x30] sm:$0xff] %vm197_vm0, %v632_v9 }
 0x248   : > { %v640_v62 = vadd.f32 %v1259_v3, %v619_v27 }
 0x24a   : > { %656 = vst.msk [vmem:[%s1265_s27 + $0x70] sm:$0xff] %vm197_vm0, %v640_v62 }
 0x24b   : > { %916 = shalt.err (!%p913_p3)
}
 0x24c   : > { %s917_s10 = scalar_lea.hbm %s1344_s5, 2048  ;;  %s921_s19 = scalar_lea.hbm %s1397_s3, 8192 }
 0x24d   : > { %p918_p4 = scmp.ne.s32.totalorder %s1344_s5, %s917_s10  ;;  %p922_p9 = scmp.lt.u32.totalorder %s1344_s5, %s1397_s3 }
 0x24e   : > { %p923_p10 = scmp.lt.u32.totalorder %s921_s19, %s917_s10  ;;  %p925_p12 = scmp.lt.u32.totalorder %s917_s10, %s1344_s5 }
 0x24f   : > { %p919_p7 = pnand %p918_p4, %p1028_p5 }
 0x250   : > { %p924_p11 = por %p923_p10, %p922_p9 }
 0x251   : > { %p920_p8 = pneg %p919_p7 }
 0x252   : > { %p926_p13 = por %p925_p12, %p924_p11 }
 0x254   : > { %p927_p0 = pnand %p926_p13, %p920_p8 }
 0x256   : > { %930 = shalt.err (!%p927_p0)
}
 0x257   : > { %s968_s25 = smov 128   ;;  %s969_s26 = smov 8  }
 0x258   : > { %830 = dma.vmem_to_hbm [thread:$0]  (%p1028_p5), %s1346_s29, 2048, %s1344_s5, %s1353_s16, %s968_s25, %s968_s25, %s969_s26  }
 0x259 PF: > { %p836_p1 = scmp.ge.s32.totalorder %s965_s15, 2  ;;  %s687_s27 = sand.u32 1, %s953_s12  }
 0x25a   : > { %s688_s28 = scalar_lea.sflag [#allocation3], %s687_s27 }
 0x25b   : > { %p833_p2 = pnand %p836_p1, %p1032_p6 }
 0x25d   : > { %948 = dma.done.wait (!%p833_p2), %s688_s28, 2048  }
 0x25e   : > { %950 = vsyncadd (!%p833_p2), %s688_s28, 4294965248  ;;  %p13_p3 = scmp.ge.s32.totalorder %s1015_s18, 6   ;;  %s1400_s12 = smov %s957_s13 }
 0x25f   : > { %s1401_s13 = smov %s961_s14  ;;  %s1402_s14 = smov %s1026_s21 }
 0x260   : > { %s1403_s15 = smov %s1015_s18  ;;  %15 = sbr.rel (!%p13_p3) target bundleno = 3 (0x3), region = 67 }
 0x267   :  { %693 = vsyncpa [#allocation3], 1 }
 0x268   :  { %695 = vsyncpa [#allocation3 + $0x1], 1 }

// kernel: patch_embed_forward.1
= control target key start
LH: loop header
LB: loop body
LE: loop exit
PB: predicated region body
PF: predicated region fallthrough
CT: control target
= control target key end

     0   :  { %8 = vsyncpa [#allocation3], 0  ;;  %s1394_s0 = inlined_call_operand.vmem [shape: f32[512,32], index: 0, kind: input, shape index: {}]   ;;  %s1395_s1 = inlined_call_operand.vmem [shape: f32[32,32], index: 1, kind: input, shape index: {}]   ;;  %s1396_s2 = inlined_call_operand.vmem [shape: f32[3,32], index: 2, kind: input, shape index: {}]   ;;  %s1397_s3 = inlined_call_operand.hbm [shape: f32[512,32], index: 3, kind: output, shape index: {}]  }
   0x1   :  { %10 = vsyncpa [#allocation3 + $0x1], 0  ;;  %s990_s12 = smov 0   ;;  %s992_s13 = smov 0  }
   0x2   :  { %s994_s14 = smov 0   ;;  %s996_s15 = smov 0  }
   0x3 LB: > { %s1011_s16 = sadd.s32 4294967295, %s965_s15   ;;  %s734_s17 = sadd.s32 4294967294, %s965_s15   ;;  %s965_s15 = sphi %s996_s15, %s1403_s15   ;;  %s961_s14 = sphi %s994_s14, %s1402_s14   ;;  %s957_s13 = sphi %s992_s13, %s1401_s13   ;;  %s953_s12 = sphi %s990_s12, %s1400_s12  }
   0x4   : > { %s1015_s18 = sadd.s32 1, %s965_s15   ;;  %s91_s19 = sadd.s32 1, %s961_s14 }
   0x5   : > { %s88_s20 = ssub.s32 %s965_s15, %s1015_s18  ;;  %p101_p0 = scmp.ne.s32.totalorder %s961_s14, %s957_s13 }
   0x6   : > { %p89_p1 = scmp.eq.s32.totalorder %s88_s20, 0  ;;  %p102_p2 = scmp.eq.s32.totalorder %s1011_s16, 3 }
   0x7   : > { %p107_p3 = scmp.ne.s32.totalorder %s957_s13, %s953_s12  ;;  %p108_p4 = scmp.eq.s32.totalorder %s734_s17, 3 }
   0x8   : > { %s1026_s21 = scalar_select %p89_p1, %s961_s14, %s91_s19  }
   0x9   : > { %p1028_p5 = por %p102_p2, %p101_p0  ;;  %p1032_p6 = por %p108_p4, %p107_p3 }
   0xa   : > { %p737_p7 = scmp.ge.s32.totalorder %s965_s15, 1  ;;  %p141_p8 = scmp.lt.s32.totalorder %s965_s15, 5 }
   0xc   : > { %p142_p9 = pnand %p737_p7, %p141_p8 }
   0xd   : > { %v188_v0 = vld [vmem:[%s1395_s1] sm:$0xff] (!%p142_p9)  ;;  %v189_v1 = vld [vmem:[%s1395_s1 + $0x8] sm:$0xff] (!%p142_p9)  ;;  %v190_v2 = vld [vmem:[%s1395_s1 + $0x10] sm:$0xff] (!%p142_p9)  ;;  %s739_s30 = sshll.u32 (!%p142_p9), %s1011_s16, 4  ;;  %vm197_vm0 = vcmask (!%p142_p9), 261120   ;;  %s162_s17 = sand.u32 (!%p142_p9), 1, %s957_s13  }
   0xe   : > { %145 = sbr.rel (%p142_p9) target bundleno = 601 (0x259), region = 32  ;;  %v818_v3 = vpack.c.bf16 (!%p142_p9), %v189_v1, %v188_v0  ;;  %v191_v4 = vld [vmem:[%s1395_s1 + $0x18] sm:$0xff] (!%p142_p9)  ;;  %p166_p10 = scmp.lt.s32.totalorder (!%p142_p9), %s739_s30, 63  ;;  %v741_v22 = vld [vmem:[%s1396_s2] ss:$0 sm:$0xff] (!%p142_p9) }
   0xf   : > { %v822_v5 = vpack.c.bf16 (!%p142_p9), %v191_v4, %v190_v2  ;;  %s738_s24 = sshll.u32 (!%p142_p9), %s162_s17, 7  ;;  %s765_s28 = sshll.u32 (!%p142_p9), %s1011_s16, 11 }
  0x10   : > { %819 = vmatprep.subr.bf16.mxu0 (!%p142_p9), %v818_v3  ;;  %826 = vmatprep.subr.bf16.mxu1 (!%p142_p9), %v818_v3  ;;  %s1265_s27 = scalar_lea.vmem (!%p142_p9), [#allocation2], %s738_s24  ;;  %s1344_s5 = scalar_lea.hbm (!%p142_p9), %s1397_s3, %s765_s28 }
  0x11   : > { %821 = vmatpush3.bf16.msra.mxu0 (!%p142_p9), %v818_v3  ;;  %828 = vmatpush3.bf16.msra.mxu1 (!%p142_p9), %v818_v3  ;;  %s672_s29 = sshll.u32 (!%p142_p9), %s1265_s27, 4  ;;  %s1353_s16 = scalar_lea.sflag (!%p142_p9), [#allocation3], %s162_s17  ;;  %s1346_s29 = int_to_ptr.vmem [resolvable:$true] %s672_s29 }
  0x12   : > { %823 = vmatprep.subr.bf16.mxu0 (!%p142_p9), %v822_v5  ;;  %827 = vmatprep.subr.bf16.mxu1 (!%p142_p9), %v822_v5  ;;  %s967_s7 = smov (!%p142_p9), [#allocation2]  }
  0x13   : > { %s907_s8 = sshll.u32 (!%p142_p9), %s967_s7, 4  ;;  %s908_s8 = int_to_ptr.vmem [resolvable:$false] %s907_s8 }
  0x14   : > { %p910_p0 = scmp.lt.s32.totalorder (!%p142_p9), %s1346_s29, %s908_s8 }
  0x15   : > { %s1405_s30 = smov (!%p166_p10, %s739_s30), 63  ;;  %825 = vmatpush3.bf16.msra.mxu0 %v822_v5  ;;  %829 = vmatpush3.bf16.msra.mxu1 %v822_v5 }
  0x16   : > { %s740_s6 = sshll.u32 %s1405_s30, 3 }
  0x17   : > { %s1054_s9 = scalar_lea.vmem %s1394_s0, %s740_s6  ;;  %s903_s6 = scalar_lea.vmem %s1346_s29, 2048 }
  0x18   : > { %v172_v6 = vld [vmem:[%s1054_s9] sm:$0xff]  ;;  %v173_v8 = vld [vmem:[%s1054_s9 + $0x8] sm:$0xff]  ;;  %v174_v10 = vld [vmem:[%s1054_s9 + $0x10] sm:$0xff]  ;;  %p904_p11 = scmp.ne.s32.totalorder %s1346_s29, %s903_s6 }
  0x19   : > { %v180_v7 = vld [vmem:[%s1054_s9 + $0x40] sm:$0xff]  ;;  %v181_v9 = vld [vmem:[%s1054_s9 + $0x48] sm:$0xff]  ;;  %794 = vmatprep.mubr.msk.f32.mxu0 %vm197_vm0, %v172_v6  ;;  %v182_v11 = vld [vmem:[%s1054_s9 + $0x50] sm:$0xff] }
  0x1a   : > { %806 = vmatprep.mubr.msk.f32.mxu1 %vm197_vm0, %v180_v7  ;;  %795 = vmatmul.mubr.msk.f32.vlgmr.msra.gmra.mrb[0].mxu0 %vm197_vm0, %v173_v8  ;;  %v175_v12 = vld [vmem:[%s1054_s9 + $0x18] sm:$0xff]  ;;  %v176_v14 = vld [vmem:[%s1054_s9 + $0x20] sm:$0xff]  ;;  %v177_v16 = vld [vmem:[%s1054_s9 + $0x28] sm:$0xff]  ;;  %p905_p12 = pnand %p904_p11, %p1028_p5 }
  0x1b   : > { %807 = vmatmul.mubr.msk.f32.vlgmr.msra.gmra.mrb[0].mxu1 %vm197_vm0, %v181_v9  ;;  %797 = vmatprep.mubr.msk.f32.mxu0 %vm197_vm0, %v174_v10  ;;  %v183_v13 = vld [vmem:[%s1054_s9 + $0x58] sm:$0xff]  ;;  %v184_v15 = vld [vmem:[%s1054_s9 + $0x60] sm:$0xff]  ;;  %v185_v17 = vld [vmem:[%s1054_s9 + $0x68] sm:$0xff] }
  0x1c   : > { %809 = vmatprep.mubr.msk.f32.mxu1 %vm197_vm0, %v182_v11  ;;  %v178_v18 = vld [vmem:[%s1054_s9 + $0x30] sm:$0xff]  ;;  %v179_v20 = vld [vmem:[%s1054_s9 + $0x38] sm:$0xff]  ;;  %p906_p13 = pneg %p905_p12 }
  0x1d   : > { %v186_v19 = vld [vmem:[%s1054_s9 + $0x70] sm:$0xff]  ;;  %v187_v21 = vld [vmem:[%s1054_s9 + $0x78] sm:$0xff]  ;;  %s909_s9 = scalar_lea.vmem %s908_s8, 4096 }
  0x1e   : > { %798 = vmatmul.mubr.msk.f32.gmra.mrb[2].mxu0 %vm197_vm0, %v175_v12  ;;  %p911_p1 = scmp.lt.s32.totalorder %s909_s9, %s903_s6 }
  0x1f   : > { %810 = vmatmul.mubr.msk.f32.gmra.mrb[2].mxu1 %vm197_vm0, %v183_v13  ;;  %800 = vmatprep.mubr.msk.f32.mxu0 %vm197_vm0, %v176_v14 }
  0x20   : > { %812 = vmatprep.mubr.msk.f32.mxu1 %vm197_vm0, %v184_v15  ;;  %p912_p2 = por %p911_p1, %p910_p0 }
  0x22   : > { %801 = vmatmul.mubr.msk.f32.gmra.mrb[4].mxu0 %vm197_vm0, %v177_v16  ;;  %p913_p3 = pnand %p912_p2, %p906_p13 }
  0x23   : > { %813 = vmatmul.mubr.msk.f32.gmra.mrb[4].mxu1 %vm197_vm0, %v185_v17  ;;  %803 = vmatprep.mubr.msk.f32.mxu0 %vm197_vm0, %v178_v18 }
  0x24   : > { %815 = vmatprep.mubr.msk.f32.mxu1 %vm197_vm0, %v186_v19 }
  0x26   : > { %804 = vmatmul.mubr.msk.f32.gmra.mrb[6].mxu0 %vm197_vm0, %v179_v20 }
  0x27   : > { %816 = vmatmul.mubr.msk.f32.gmra.mrb[6].mxu1 %vm197_vm0, %v187_v21 }
  0xed   : > { %v796_v23 = vpop.f32.mrb[0].mxu0 }
  0xee   : > { %v808_v24 = vpop.f32.mrb[0].mxu1  ;;  %v1091_v25 = vadd.f32 %v796_v23, %v741_v22  ;;  %v312_v27 = vpop.f32.mrb[1].mxu0 }
  0xef   : > { %v1093_v26 = vadd.f32 %v808_v24, %v741_v22  ;;  %v352_v28 = vpop.f32.mrb[1].mxu1  ;;  %v1095_v29 = vadd.f32 %v741_v22, %v312_v27 }
  0xf0   : > { %v394_v31 = vsel %vm197_vm0, %v1091_v25, 0.0  ;;  %v1103_v38 = vadd.f32 %v741_v22, %v352_v28 }
  0xf1   : > { %v418_v30 = vsel %vm197_vm0, %v1093_v26, 0.0  ;;  %395 = vadd.xlane.f32.xlu0 %v394_v31  ;;  %v799_v32 = vpop.f32.mrb[2].mxu0  ;;  %v391_v40 = vsel %vm197_vm0, %v1095_v29, 0.0 }
  0xf2   : > { %419 = vadd.xlane.f32.xlu1 %v418_v30  ;;  %v811_v33 = vpop.f32.mrb[2].mxu1  ;;  %v328_v34 = vadd.f32 %v799_v32, %v741_v22  ;;  %v322_v35 = vpop.f32.mrb[3].mxu0  ;;  %v415_v48 = vsel %vm197_vm0, %v1103_v38, 0.0 }
  0xf3   : > { %v1101_v36 = vadd.f32 %v811_v33, %v741_v22  ;;  %v362_v37 = vpop.f32.mrb[3].mxu1  ;;  %v1110_v46 = vadd.f32 %v741_v22, %v322_v35 }
  0xf4   : > { %v400_v39 = vsel %vm197_vm0, %v328_v34, 0.0  ;;  %v1112_v47 = vadd.f32 %v741_v22, %v362_v37 }
  0xf5   : > { %392 = vadd.xlane.f32.xlu0 %v391_v40  ;;  %v802_v41 = vpop.f32.mrb[4].mxu0  ;;  %v424_v43 = vsel %vm197_vm0, %v1101_v36, 0.0  ;;  %v397_v55 = vsel %vm197_vm0, %v1110_v46, 0.0 }
  0xf6   : > { %401 = vadd.xlane.f32.xlu1 %v400_v39  ;;  %v814_v42 = vpop.f32.mrb[4].mxu1  ;;  %v332_v44 = vpop.f32.mrb[5].mxu0  ;;  %v1116_v51 = vadd.f32 %v802_v41, %v741_v22  ;;  %v421_v56 = vsel %vm197_vm0, %v1112_v47, 0.0 }
  0xf7   : > { %v372_v45 = vpop.f32.mrb[5].mxu1  ;;  %v1118_v52 = vadd.f32 %v741_v22, %v332_v44  ;;  %v1124_v57 = vadd.f32 %v814_v42, %v741_v22 }
  0xf8   : > { %v1126_v58 = vadd.f32 %v741_v22, %v372_v45  ;;  %v406_v59 = vsel %vm197_vm0, %v1116_v51, 0.0 }
  0xf9   : > { %416 = vadd.xlane.f32.xlu0 %v415_v48  ;;  %v805_v49 = vpop.f32.mrb[6].mxu0  ;;  %v403_v60 = vsel %vm197_vm0, %v1118_v52, 0.0  ;;  %v430_v63 = vsel %vm197_vm0, %v1124_v57, 0.0 }
  0xfa   : > { %425 = vadd.xlane.f32.xlu1 %v424_v43  ;;  %v817_v50 = vpop.f32.mrb[6].mxu1  ;;  %v342_v53 = vpop.f32.mrb[7].mxu0  ;;  %v1132_v61 = vadd.f32 %v805_v49, %v741_v22  ;;  %v427_v0 = vsel %vm197_vm0, %v1126_v58, 0.0 }
  0xfb   : > { %v382_v54 = vpop.f32.mrb[7].mxu1  ;;  %v1134_v62 = vadd.f32 %v741_v22, %v342_v53  ;;  %v1140_v1 = vadd.f32 %v817_v50, %v741_v22 }
  0xfc   : > { %v1142_v2 = vadd.f32 %v741_v22, %v382_v54  ;;  %v412_v3 = vsel %vm197_vm0, %v1132_v61, 0.0 }
  0xfd   : > { %422 = vadd.xlane.f32.xlu0 %v421_v56  ;;  %v409_v4 = vsel %vm197_vm0, %v1134_v62, 0.0  ;;  %v436_v5 = vsel %vm197_vm0, %v1140_v1, 0.0 }
  0xfe   : > { %398 = vadd.xlane.f32.xlu1 %v397_v55  ;;  %v433_v6 = vsel %vm197_vm0, %v1142_v2, 0.0 }
 0x101   : > { %404 = vadd.xlane.f32.xlu0 %v403_v60 }
 0x102   : > { %407 = vadd.xlane.f32.xlu1 %v406_v59 }
 0x105   : > { %428 = vadd.xlane.f32.xlu0 %v427_v0 }
 0x106   : > { %431 = vadd.xlane.f32.xlu1 %v430_v63 }
 0x109   : > { %410 = vadd.xlane.f32.xlu0 %v409_v4 }
 0x10a   : > { %413 = vadd.xlane.f32.xlu1 %v412_v3 }
 0x10d   : > { %434 = vadd.xlane.f32.xlu0 %v433_v6 }
 0x10e   : > { %437 = vadd.xlane.f32.xlu1 %v436_v5 }
 0x17e   : > { %v396_v8 = vpop.xlane.xlu0 %395 }
 0x17f   : > { %v420_v7 = vpop.xlane.xlu1 %419  ;;  %v441_v10 = vmul.f32 0.03125, %v396_v8 }
 0x180   : > { %v449_v9 = vmul.f32 0.03125, %v420_v7 }
 0x181   : > { %v1156_v12 = vsub.f32 %v1091_v25, %v441_v10 }
 0x182   : > { %v1153_v11 = vsub.f32 %v1093_v26, %v449_v9  ;;  %v393_v14 = vpop.xlane.xlu0 %392 }
 0x183   : > { %v402_v13 = vpop.xlane.xlu1 %401  ;;  %v440_v16 = vmul.f32 0.03125, %v393_v14  ;;  %v473_v17 = vmul.f32 %v1156_v12, %v1156_v12 }
 0x184   : > { %v443_v15 = vmul.f32 0.03125, %v402_v13  ;;  %v481_v21 = vmul.f32 %v1153_v11, %v1153_v11 }
 0x185   : > { %v1163_v19 = vsub.f32 %v1095_v29, %v440_v16  ;;  %v491_v20 = vsel %vm197_vm0, %v473_v17, 0.0 }
 0x186   : > { %v1160_v18 = vsub.f32 %v328_v34, %v443_v15  ;;  %492 = vadd.xlane.f32.xlu1 %v491_v20  ;;  %v417_v23 = vpop.xlane.xlu0 %416  ;;  %v515_v30 = vsel %vm197_vm0, %v481_v21, 0.0 }
 0x187   : > { %v426_v22 = vpop.xlane.xlu1 %425  ;;  %v448_v25 = vmul.f32 0.03125, %v417_v23  ;;  %v472_v26 = vmul.f32 %v1163_v19, %v1163_v19 }
 0x188   : > { %v451_v24 = vmul.f32 0.03125, %v426_v22  ;;  %v475_v27 = vmul.f32 %v1160_v18, %v1160_v18 }
 0x189   : > { %v1176_v29 = vsub.f32 %v1103_v38, %v448_v25  ;;  %v488_v31 = vsel %vm197_vm0, %v472_v26, 0.0 }
 0x18a   : > { %v1173_v28 = vsub.f32 %v1101_v36, %v451_v24  ;;  %516 = vadd.xlane.f32.xlu1 %v515_v30  ;;  %489 = vadd.xlane.f32.xlu0 %v488_v31  ;;  %v423_v33 = vpop.xlane.xlu0 %422  ;;  %v497_v39 = vsel %vm197_vm0, %v475_v27, 0.0 }
 0x18b   : > { %v399_v32 = vpop.xlane.xlu1 %398  ;;  %v450_v35 = vmul.f32 0.03125, %v423_v33  ;;  %v480_v37 = vmul.f32 %v1176_v29, %v1176_v29 }
 0x18c   : > { %v442_v34 = vmul.f32 0.03125, %v399_v32  ;;  %v483_v41 = vmul.f32 %v1173_v28, %v1173_v28 }
 0x18d   : > { %v1187_v38 = vsub.f32 %v1112_v47, %v450_v35  ;;  %v512_v40 = vsel %vm197_vm0, %v480_v37, 0.0 }
 0x18e   : > { %v1184_v36 = vsub.f32 %v1110_v46, %v442_v34  ;;  %498 = vadd.xlane.f32.xlu1 %v497_v39  ;;  %513 = vadd.xlane.f32.xlu0 %v512_v40  ;;  %v405_v43 = vpop.xlane.xlu0 %404  ;;  %v521_v50 = vsel %vm197_vm0, %v483_v41, 0.0 }
 0x18f   : > { %v408_v42 = vpop.xlane.xlu1 %407  ;;  %v444_v45 = vmul.f32 0.03125, %v405_v43  ;;  %v482_v46 = vmul.f32 %v1187_v38, %v1187_v38 }
 0x190   : > { %v445_v44 = vmul.f32 0.03125, %v408_v42  ;;  %v474_v48 = vmul.f32 %v1184_v36, %v1184_v36 }
 0x191   : > { %v1200_v49 = vsub.f32 %v1118_v52, %v444_v45  ;;  %v518_v63 = vsel %vm197_vm0, %v482_v46, 0.0 }
 0x192   : > { %v1197_v47 = vsub.f32 %v1116_v51, %v445_v44  ;;  %v494_v53 = vsel %vm197_vm0, %v474_v48, 0.0  ;;  %522 = vadd.xlane.f32.xlu1 %v521_v50  ;;  %v429_v55 = vpop.xlane.xlu0 %428 }
 0x193   : > { %v432_v54 = vpop.xlane.xlu1 %431  ;;  %495 = vadd.xlane.f32.xlu0 %v494_v53  ;;  %v452_v59 = vmul.f32 0.03125, %v429_v55  ;;  %v476_v3 = vmul.f32 %v1200_v49, %v1200_v49  ;;  %v1251_v55 = vld [vmem:[%s1396_s2 + $0x1] ss:$0 sm:$0xff] }
 0x194   : > { %v453_v56 = vmul.f32 0.03125, %v432_v54  ;;  %v477_v60 = vmul.f32 %v1197_v47, %v1197_v47 }
 0x195   : > { %v1211_v52 = vsub.f32 %v1126_v58, %v452_v59  ;;  %v500_v13 = vsel %vm197_vm0, %v476_v3, 0.0  ;;  %v1259_v3 = vld [vmem:[%s1396_s2 + $0x2] ss:$0 sm:$0xff] }
 0x196   : > { %v1208_v51 = vsub.f32 %v1124_v57, %v453_v56  ;;  %v503_v0 = vsel %vm197_vm0, %v477_v60, 0.0  ;;  %v411_v5 = vpop.xlane.xlu0 %410 }
 0x197   : > { %504 = vadd.xlane.f32.xlu1 %v503_v0  ;;  %v414_v4 = vpop.xlane.xlu1 %413  ;;  %519 = vadd.xlane.f32.xlu0 %v518_v63  ;;  %v446_v7 = vmul.f32 0.03125, %v411_v5  ;;  %v484_v57 = vmul.f32 %v1211_v52, %v1211_v52 }
 0x198   : > { %v447_v6 = vmul.f32 0.03125, %v414_v4  ;;  %v485_v8 = vmul.f32 %v1208_v51, %v1208_v51 }
 0x199   : > { %v1224_v9 = vsub.f32 %v1134_v62, %v446_v7  ;;  %v524_v21 = vsel %vm197_vm0, %v484_v57, 0.0 }
 0x19a   : > { %v1221_v58 = vsub.f32 %v1132_v61, %v447_v6  ;;  %v527_v10 = vsel %vm197_vm0, %v485_v8, 0.0  ;;  %v435_v15 = vpop.xlane.xlu0 %434 }
 0x19b   : > { %528 = vadd.xlane.f32.xlu1 %v527_v10  ;;  %v438_v14 = vpop.xlane.xlu1 %437  ;;  %501 = vadd.xlane.f32.xlu0 %v500_v13  ;;  %v454_v17 = vmul.f32 0.03125, %v435_v15  ;;  %v478_v23 = vmul.f32 %v1224_v9, %v1224_v9 }
 0x19c   : > { %v455_v16 = vmul.f32 0.03125, %v438_v14  ;;  %v479_v20 = vmul.f32 %v1221_v58, %v1221_v58 }
 0x19d   : > { %v1235_v62 = vsub.f32 %v1142_v2, %v454_v17  ;;  %v506_v26 = vsel %vm197_vm0, %v478_v23, 0.0 }
 0x19e   : > { %v1232_v61 = vsub.f32 %v1140_v1, %v455_v16  ;;  %v509_v22 = vsel %vm197_vm0, %v479_v20, 0.0 }
 0x19f   : > { %510 = vadd.xlane.f32.xlu1 %v509_v22  ;;  %525 = vadd.xlane.f32.xlu0 %v524_v21  ;;  %v486_v1 = vmul.f32 %v1235_v62, %v1235_v62 }
 0x1a0   : > { %v487_v24 = vmul.f32 %v1232_v61, %v1232_v61 }
 0x1a1   : > { %v530_v2 = vsel %vm197_vm0, %v486_v1, 0.0 }
 0x1a2   : > { %v533_v25 = vsel %vm197_vm0, %v487_v24, 0.0 }
 0x1a3   : > { %534 = vadd.xlane.f32.xlu1 %v533_v25  ;;  %507 = vadd.xlane.f32.xlu0 %v506_v26 }
 0x1a7   : > { %531 = vadd.xlane.f32.xlu0 %v530_v2 }
 0x213   : > { %v493_v27 = vpop.xlane.xlu1 %492 }
 0x214   : > { %v537_v30 = vmul.f32 0.03125, %v493_v27 }
 0x216   : > { %v553_v31 = vadd.f32 1e-05, %v537_v30 }
 0x217   : > { %v517_v32 = vpop.xlane.xlu1 %516  ;;  %v490_v33 = vpop.xlane.xlu0 %489 }
 0x218   : > { %871 = vrsqrt.f32 %v553_v31  ;;  %v545_v34 = vmul.f32 0.03125, %v517_v32  ;;  %v536_v35 = vmul.f32 0.03125, %v490_v33 }
 0x21a   : > { %v561_v37 = vadd.f32 1e-05, %v545_v34  ;;  %v552_v39 = vadd.f32 1e-05, %v536_v35 }
 0x21b   : > { %v499_v40 = vpop.xlane.xlu1 %498  ;;  %v514_v41 = vpop.xlane.xlu0 %513 }
 0x21c   : > { %873 = vrsqrt.f32 %v561_v37  ;;  %v539_v42 = vmul.f32 0.03125, %v499_v40  ;;  %v544_v43 = vmul.f32 0.03125, %v514_v41 }
 0x21d   : > { %875 = vrsqrt.f32 %v552_v39 }
 0x21e   : > { %v555_v44 = vadd.f32 1e-05, %v539_v42  ;;  %v560_v45 = vadd.f32 1e-05, %v544_v43 }
 0x21f   : > { %v523_v48 = vpop.xlane.xlu1 %522 }
 0x220   : > { %v496_v46 = vpop.xlane.xlu0 %495  ;;  %877 = vrsqrt.f32 %v555_v44  ;;  %v547_v50 = vmul.f32 0.03125, %v523_v48 }
 0x221   : > { %v538_v53 = vmul.f32 0.03125, %v496_v46  ;;  %879 = vrsqrt.f32 %v560_v45 }
 0x222   : > { %v872_v54 = vpop.eup %871  ;;  %v563_v56 = vadd.f32 1e-05, %v547_v50 }
 0x223   : > { %v554_v59 = vadd.f32 1e-05, %v538_v53  ;;  %v585_v60 = vmul.f32 %v872_v54, %v1156_v12 }
 0x224   : > { %v505_v63 = vpop.xlane.xlu1 %504  ;;  %v520_v0 = vpop.xlane.xlu0 %519  ;;  %881 = vrsqrt.f32 %v563_v56 }
 0x225   : > { %v541_v4 = vmul.f32 0.03125, %v505_v63  ;;  %v546_v5 = vmul.f32 0.03125, %v520_v0  ;;  %v606_v6 = vmul.f32 %v1251_v55, %v585_v60  ;;  %883 = vrsqrt.f32 %v554_v59 }
 0x226   : > { %v874_v7 = vpop.eup %873 }
 0x227   : > { %v557_v8 = vadd.f32 1e-05, %v541_v4  ;;  %v562_v57 = vadd.f32 1e-05, %v546_v5  ;;  %v876_v10 = vpop.eup %875  ;;  %v627_v13 = vadd.f32 %v1259_v3, %v606_v6  ;;  %v593_v12 = vmul.f32 %v874_v7, %v1153_v11 }
 0x228   : > { %v529_v14 = vpop.xlane.xlu1 %528  ;;  %v502_v15 = vpop.xlane.xlu0 %501  ;;  %v584_v16 = vmul.f32 %v876_v10, %v1163_v19 }
 0x229   : > { %885 = vrsqrt.f32 %v557_v8  ;;  %v549_v17 = vmul.f32 0.03125, %v529_v14  ;;  %v540_v20 = vmul.f32 0.03125, %v502_v15  ;;  %643 = vst.msk [vmem:[%s1265_s27 + $0x8] sm:$0xff] %vm197_vm0, %v627_v13  ;;  %v614_v21 = vmul.f32 %v1251_v55, %v593_v12 }
 0x22a   : > { %887 = vrsqrt.f32 %v562_v57  ;;  %v878_v22 = vpop.eup %877  ;;  %v605_v23 = vmul.f32 %v1251_v55, %v584_v16 }
 0x22b   : > { %v565_v11 = vadd.f32 1e-05, %v549_v17  ;;  %v556_v24 = vadd.f32 1e-05, %v540_v20  ;;  %v880_v25 = vpop.eup %879  ;;  %v635_v19 = vadd.f32 %v1259_v3, %v614_v21  ;;  %v587_v26 = vmul.f32 %v878_v22, %v1160_v18 }
 0x22c   : > { %v511_v1 = vpop.xlane.xlu1 %510  ;;  %v526_v2 = vpop.xlane.xlu0 %525  ;;  %v626_v27 = vadd.f32 %v1259_v3, %v605_v23  ;;  %v592_v30 = vmul.f32 %v880_v25, %v1176_v29 }
 0x22d   : > { %889 = vrsqrt.f32 %v565_v11  ;;  %v543_v31 = vmul.f32 0.03125, %v511_v1  ;;  %651 = vst.msk [vmem:[%s1265_s27 + $0x48] sm:$0xff] %vm197_vm0, %v635_v19  ;;  %v608_v32 = vmul.f32 %v1251_v55, %v587_v26  ;;  %v548_v33 = vmul.f32 0.03125, %v526_v2 }
 0x22e   : > { %891 = vrsqrt.f32 %v556_v24  ;;  %v882_v34 = vpop.eup %881  ;;  %642 = vst.msk [vmem:[%s1265_s27] sm:$0xff] %vm197_vm0, %v626_v27  ;;  %v613_v18 = vmul.f32 %v1251_v55, %v592_v30 }
 0x22f   : > { %v559_v35 = vadd.f32 1e-05, %v543_v31  ;;  %v884_v37 = vpop.eup %883  ;;  %v629_v39 = vadd.f32 %v1259_v3, %v608_v32  ;;  %v595_v29 = vmul.f32 %v882_v34, %v1173_v28  ;;  %v564_v40 = vadd.f32 1e-05, %v548_v33 }
 0x230   : > { %v535_v41 = vpop.xlane.xlu1 %534  ;;  %v508_v42 = vpop.xlane.xlu0 %507  ;;  %v634_v43 = vadd.f32 %v1259_v3, %v613_v18  ;;  %v586_v44 = vmul.f32 %v884_v37, %v1184_v36 }
 0x231   : > { %893 = vrsqrt.f32 %v559_v35  ;;  %v551_v45 = vmul.f32 0.03125, %v535_v41  ;;  %645 = vst.msk [vmem:[%s1265_s27 + $0x18] sm:$0xff] %vm197_vm0, %v629_v39  ;;  %v616_v48 = vmul.f32 %v1251_v55, %v595_v29  ;;  %v542_v46 = vmul.f32 0.03125, %v508_v42 }
 0x232   : > { %895 = vrsqrt.f32 %v564_v40  ;;  %650 = vst.msk [vmem:[%s1265_s27 + $0x40] sm:$0xff] %vm197_vm0, %v634_v43  ;;  %v607_v28 = vmul.f32 %v1251_v55, %v586_v44 }
 0x233   : > { %v886_v50 = vpop.eup %885  ;;  %v567_v53 = vadd.f32 1e-05, %v551_v45  ;;  %v637_v56 = vadd.f32 %v1259_v3, %v616_v48  ;;  %v558_v59 = vadd.f32 1e-05, %v542_v46 }
 0x234   : > { %v888_v54 = vpop.eup %887  ;;  %v589_v36 = vmul.f32 %v886_v50, %v1197_v47  ;;  %v532_v60 = vpop.xlane.xlu0 %531  ;;  %v628_v63 = vadd.f32 %v1259_v3, %v607_v28 }
 0x235   : > { %v594_v0 = vmul.f32 %v888_v54, %v1187_v38  ;;  %897 = vrsqrt.f32 %v567_v53  ;;  %v550_v4 = vmul.f32 0.03125, %v532_v60  ;;  %653 = vst.msk [vmem:[%s1265_s27 + $0x58] sm:$0xff] %vm197_vm0, %v637_v56 }
 0x236   : > { %v610_v5 = vmul.f32 %v1251_v55, %v589_v36  ;;  %899 = vrsqrt.f32 %v558_v59  ;;  %644 = vst.msk [vmem:[%s1265_s27 + $0x10] sm:$0xff] %vm197_vm0, %v628_v63 }
 0x237   : > { %v890_v6 = vpop.eup %889  ;;  %v615_v47 = vmul.f32 %v1251_v55, %v594_v0  ;;  %v566_v7 = vadd.f32 1e-05, %v550_v4 }
 0x238   : > { %v892_v8 = vpop.eup %891  ;;  %v631_v57 = vadd.f32 %v1259_v3, %v610_v5  ;;  %v597_v38 = vmul.f32 %v890_v6, %v1208_v51 }
 0x239   : > { %v636_v10 = vadd.f32 %v1259_v3, %v615_v47  ;;  %v588_v13 = vmul.f32 %v892_v8, %v1200_v49  ;;  %901 = vrsqrt.f32 %v566_v7 }
 0x23a   : > { %647 = vst.msk [vmem:[%s1265_s27 + $0x28] sm:$0xff] %vm197_vm0, %v631_v57  ;;  %v618_v12 = vmul.f32 %v1251_v55, %v597_v38 }
 0x23b   : > { %v894_v14 = vpop.eup %893  ;;  %652 = vst.msk [vmem:[%s1265_s27 + $0x50] sm:$0xff] %vm197_vm0, %v636_v10  ;;  %v609_v15 = vmul.f32 %v1251_v55, %v588_v13 }
 0x23c   : > { %v896_v16 = vpop.eup %895  ;;  %v639_v17 = vadd.f32 %v1259_v3, %v618_v12  ;;  %v591_v51 = vmul.f32 %v894_v14, %v1221_v58 }
 0x23d   : > { %v630_v20 = vadd.f32 %v1259_v3, %v609_v15  ;;  %v596_v49 = vmul.f32 %v896_v16, %v1211_v52 }
 0x23e   : > { %655 = vst.msk [vmem:[%s1265_s27 + $0x68] sm:$0xff] %vm197_vm0, %v639_v17  ;;  %v612_v21 = vmul.f32 %v1251_v55, %v591_v51 }
 0x23f   : > { %v898_v22 = vpop.eup %897  ;;  %646 = vst.msk [vmem:[%s1265_s27 + $0x20] sm:$0xff] %vm197_vm0, %v630_v20  ;;  %v617_v23 = vmul.f32 %v1251_v55, %v596_v49 }
 0x240   : > { %v900_v11 = vpop.eup %899  ;;  %v633_v58 = vadd.f32 %v1259_v3, %v612_v21  ;;  %v599_v24 = vmul.f32 %v898_v22, %v1232_v61 }
 0x241   : > { %v638_v52 = vadd.f32 %v1259_v3, %v617_v23  ;;  %v590_v25 = vmul.f32 %v900_v11, %v1224_v9 }
 0x242   : > { %649 = vst.msk [vmem:[%s1265_s27 + $0x38] sm:$0xff] %vm197_vm0, %v633_v58  ;;  %v620_v19 = vmul.f32 %v1251_v55, %v599_v24 }
 0x243   : > { %v902_v26 = vpop.eup %901  ;;  %654 = vst.msk [vmem:[%s1265_s27 + $0x60] sm:$0xff] %vm197_vm0, %v638_v52  ;;  %v611_v1 = vmul.f32 %v1251_v55, %v590_v25 }
 0x244   : > { %v641_v2 = vadd.f32 %v1259_v3, %v620_v19  ;;  %v598_v61 = vmul.f32 %v902_v26, %v1235_v62 }
 0x245   : > { %v632_v9 = vadd.f32 %v1259_v3, %v611_v1 }
 0x246   : > { %657 = vst.msk [vmem:[%s1265_s27 + $0x78] sm:$0xff] %vm197_vm0, %v641_v2  ;;  %v619_v27 = vmul.f32 %v1251_v55, %v598_v61 }
 0x247   : > { %648 = vst.msk [vmem:[%s1265_s27 + $0x30] sm:$0xff] %vm197_vm0, %v632_v9 }
 0x248   : > { %v640_v62 = vadd.f32 %v1259_v3, %v619_v27 }
 0x24a   : > { %656 = vst.msk [vmem:[%s1265_s27 + $0x70] sm:$0xff] %vm197_vm0, %v640_v62 }
 0x24b   : > { %916 = shalt.err (!%p913_p3)
}
 0x24c   : > { %s917_s10 = scalar_lea.hbm %s1344_s5, 2048  ;;  %s921_s19 = scalar_lea.hbm %s1397_s3, 8192 }
 0x24d   : > { %p918_p4 = scmp.ne.s32.totalorder %s1344_s5, %s917_s10  ;;  %p922_p9 = scmp.lt.u32.totalorder %s1344_s5, %s1397_s3 }
 0x24e   : > { %p923_p10 = scmp.lt.u32.totalorder %s921_s19, %s917_s10  ;;  %p925_p12 = scmp.lt.u32.totalorder %s917_s10, %s1344_s5 }
 0x24f   : > { %p919_p7 = pnand %p918_p4, %p1028_p5 }
 0x250   : > { %p924_p11 = por %p923_p10, %p922_p9 }
 0x251   : > { %p920_p8 = pneg %p919_p7 }
 0x252   : > { %p926_p13 = por %p925_p12, %p924_p11 }
 0x254   : > { %p927_p0 = pnand %p926_p13, %p920_p8 }
 0x256   : > { %930 = shalt.err (!%p927_p0)
}
 0x257   : > { %s968_s25 = smov 128   ;;  %s969_s26 = smov 8  }
 0x258   : > { %830 = dma.vmem_to_hbm [thread:$0]  (%p1028_p5), %s1346_s29, 2048, %s1344_s5, %s1353_s16, %s968_s25, %s968_s25, %s969_s26  }
 0x259 PF: > { %p836_p1 = scmp.ge.s32.totalorder %s965_s15, 2  ;;  %s687_s27 = sand.u32 1, %s953_s12  }
 0x25a   : > { %s688_s28 = scalar_lea.sflag [#allocation3], %s687_s27 }
 0x25b   : > { %p833_p2 = pnand %p836_p1, %p1032_p6 }
 0x25d   : > { %948 = dma.done.wait (!%p833_p2), %s688_s28, 2048  }
 0x25e   : > { %950 = vsyncadd (!%p833_p2), %s688_s28, 4294965248  ;;  %p13_p3 = scmp.ge.s32.totalorder %s1015_s18, 6   ;;  %s1400_s12 = smov %s957_s13 }
 0x25f   : > { %s1401_s13 = smov %s961_s14  ;;  %s1402_s14 = smov %s1026_s21 }
 0x260   : > { %s1403_s15 = smov %s1015_s18  ;;  %15 = sbr.rel (!%p13_p3) target bundleno = 3 (0x3), region = 67 }
 0x267   :  { %693 = vsyncpa [#allocation3], 1 }
 0x268   :  { %695 = vsyncpa [#allocation3 + $0x1], 1 }

</bundles_post_ra>
